<compile_context>
chip_gen: v7x
topology: tpu7x:2x2x1
jax: 0.10.0
libtpu: 0.0.40
codegen_flags: <defaults>
</compile_context>

<pallas_src>
import functools

import jax
import jax.numpy as jnp
from jax.experimental import pallas as pl
from jax.experimental.pallas import tpu as pltpu


# ----------------------------- Pallas kernel -------------------------------

def cloudcrop_mlp_kernel(x_ref, w1_ref, b1_ref, w2_ref, b2_ref, o_ref, *,
                         tile_p, nsample):
    # x_ref: (tile_p*nsample, Cin) bf16 (pre-flattened in the wrapper so both
    # matmuls are single large 2-D MXU matmuls, not per-seed M=nsample ones).
    x = x_ref[...]
    h1 = jnp.dot(x, w1_ref[...], preferred_element_type=jnp.float32)   # (tp*S, H1) f32 acc
    h1 = jnp.maximum(h1 + b1_ref[...], 0.0)                            # BN bias + ReLU (scale folded into w1)
    h2 = jnp.dot(h1.astype(jnp.bfloat16), w2_ref[...],
                 preferred_element_type=jnp.float32)                   # (tp*S, H2)
    h2 = jnp.maximum(h2 + b2_ref[...], 0.0)                            # BN bias + ReLU
    # sublane-aligned split (nsample multiple of 8) -> reduce over samples
    h2 = h2.reshape(tile_p, nsample, h2.shape[-1])
    o_ref[...] = jnp.max(h2, axis=1)                                   # max-pool over nsample


def _round_up(x, m):
    return (x + m - 1) // m * m


def cloudcrop_mlp(x_psc, w1, b1, w2, b2, *, tile_p=256):
    """x_psc: (P, S, Cin).  w1/w2: bf16 with BN scale folded in.  b1/b2: (1,H) f32."""
    P, S, Cin = x_psc.shape
    H1 = w1.shape[1]
    H2 = w2.shape[1]

    # tile: multiple of 8 seed rows; keep grid >= 2 steps when possible so the
    # "parallel" axis can be sharded across TensorCores (v7x megacore).
    tp = min(tile_p, max(8, _round_up((P + 1) // 2, 8)))
    P_pad = _round_up(P, tp)
    if P_pad != P:
        x_psc = jnp.pad(x_psc, ((0, P_pad - P), (0, 0), (0, 0)))

    # flatten (P_pad, S, Cin) -> (P_pad*S, Cin) OUTSIDE the kernel (free here,
    # would risk a VMEM copy inside) and cast matmul input to bf16.
    x2d = x_psc.reshape(P_pad * S, Cin).astype(jnp.bfloat16)

    kernel = functools.partial(cloudcrop_mlp_kernel, tile_p=tp, nsample=S)
    out = pl.pallas_call(
        kernel,
        out_shape=jax.ShapeDtypeStruct((P_pad, H2), jnp.float32),
        grid_spec=pltpu.PrefetchScalarGridSpec(
            num_scalar_prefetch=0,
            grid=(P_pad // tp,),
            in_specs=[
                pl.BlockSpec((tp * S, Cin), lambda i: (i, 0)),
                pl.BlockSpec((Cin, H1), lambda i: (0, 0)),
                pl.BlockSpec((1, H1), lambda i: (0, 0)),
                pl.BlockSpec((H1, H2), lambda i: (0, 0)),
                pl.BlockSpec((1, H2), lambda i: (0, 0)),
            ],
            out_specs=pl.BlockSpec((tp, H2), lambda i: (i, 0)),
        ),
        compiler_params=pltpu.CompilerParams(
            dimension_semantics=("parallel",),
            # tp=256, S=16: ~11 MiB live (h1/h2 f32 + bf16 x/h1 + dbl-buffered
            # I/O) — well under v7x's 64 MiB per-TC VMEM.
            vmem_limit_bytes=48 * 1024 * 1024,
        ),
    )(x2d, w1, b1, w2, b2)
    return out[:P]


# --------------------- CylinderQueryAndGroup (JAX glue) --------------------

def cylinder_query_and_group(xyz, features, rot, *, radius, hmin, hmax, nsample):
    """xyz: (B,N,3)  features: (B,C,N)  rot: (B,N,3,3) -> (B, N, nsample, 3+C)."""
    B, N, _ = xyz.shape

    # relative coords of every point k w.r.t. every query q, expressed in the
    # rotated (gripper) frame: (R^T rel) == rel @ R   (matches the CUDA op).
    # TODO(synk): for large N the O(N^2) cylinder test + top-nsample selection
    # should move into a Pallas kernel with a scalar-prefetched index table.
    rel = xyz[:, None, :, :] - xyz[:, :, None, :]                 # (B,Nq,Nk,3)
    rel_rot = jnp.einsum("bqkc,bqcd->bqkd", rel, rot)             # (B,Nq,Nk,3)
    d2 = rel_rot[..., 1] ** 2 + rel_rot[..., 2] ** 2
    mask = (d2 < radius * radius) & (rel_rot[..., 0] > hmin) & (rel_rot[..., 0] < hmax)

    # first `nsample` valid indices in increasing k; pad with the first valid
    # index; if no valid point at all, fall back to index 0 (CUDA behaviour).
    sentinel = N
    cand = jnp.where(mask, jnp.arange(N)[None, None, :], sentinel)
    cand = jnp.sort(cand, axis=-1)[..., :nsample]                 # (B,Nq,nsample)
    first = cand[..., :1]
    idx = jnp.where(cand == sentinel, first, cand)
    idx = jnp.where(idx == sentinel, 0, idx)

    # direct batched gather (no (B,N,N,*) broadcasts materialized)
    def gather_points(points, ind):                               # (N,D), (Nq,ns)
        return points[ind]                                        # (Nq,ns,D)

    grouped_xyz = jax.vmap(gather_points)(xyz, idx)               # (B,Nq,ns,3)
    grouped_xyz = (grouped_xyz - xyz[:, :, None, :]) / radius     # center + normalize_xyz
    grouped_xyz = jnp.einsum("bqsc,bqcd->bqsd", grouped_xyz, rot) # rotate_xyz

    feat = jnp.transpose(features, (0, 2, 1))                     # (B,N,C)
    grouped_feat = jax.vmap(gather_points)(feat, idx)             # (B,Nq,ns,C)

    # use_xyz=True -> concat xyz first (channel order matches PyTorch dim=1 cat)
    return jnp.concatenate([grouped_xyz, grouped_feat], axis=-1)  # (B,Nq,ns,3+C)


# ------------------------------ CloudCrop ----------------------------------

def make_cloudcrop_params(key, in_dim, hidden=(256, 256)):
    cin = 3 + in_dim
    k = jax.random.split(key, 4)
    eps = 1e-5
    # conv weights (1x1 convs -> plain matmuls); SharedMLP with bn=True has no conv bias.
    w1 = jax.random.normal(k[0], (cin, hidden[0]), jnp.float32) * 0.05
    w2 = jax.random.normal(k[1], (hidden[0], hidden[1]), jnp.float32) * 0.05

    # BatchNorm params + running stats, folded to scale/bias (inference mode).
    def fold_bn(kk, h):
        kk = jax.random.split(kk, 4)
        g = 1.0 + 0.1 * jax.random.normal(kk[0], (h,), jnp.float32)
        b = 0.1 * jax.random.normal(kk[1], (h,), jnp.float32)
        m = 0.05 * jax.random.normal(kk[2], (h,), jnp.float32)
        v = jnp.abs(1.0 + 0.1 * jax.random.normal(kk[3], (h,), jnp.float32))
        scale = g / jnp.sqrt(v + eps)
        bias = b - m * scale
        return scale.reshape(1, h), bias.reshape(1, h)

    s1, b1 = fold_bn(k[2], hidden[0])
    s2, b2 = fold_bn(k[3], hidden[1])
    return dict(w1=w1, s1=s1, b1=b1, w2=w2, s2=s2, b2=b2)


def cloudcrop_forward(params, seed_xyz, seed_features, vp_rot, *,
                      nsample, cylinder_radius=0.05, hmin=-0.02, hmax=0.04,
                      tile_p=256):
    B, N, _ = seed_xyz.shape
    grouped = cylinder_query_and_group(
        seed_xyz, seed_features, vp_rot,
        radius=cylinder_radius, hmin=hmin, hmax=hmax, nsample=nsample)  # (B,N,ns,Cin)
    P = B * N
    x_psc = grouped.reshape(P, nsample, grouped.shape[-1])

    # fold BN scale into the conv weights (inference-mode BN), cast to bf16
    w1 = (params["w1"] * params["s1"]).astype(jnp.bfloat16)
    w2 = (params["w2"] * params["s2"]).astype(jnp.bfloat16)

    out = cloudcrop_mlp(x_psc, w1, params["b1"], w2, params["b2"],
                        tile_p=tile_p)                                  # (P, H2)
    H2 = out.shape[-1]
    return jnp.transpose(out.reshape(B, N, H2), (0, 2, 1))              # (B, H2, N)


# ------------------------------- reference ---------------------------------

def cloudcrop_mlp_ref(grouped, p):
    h1 = jnp.maximum(jnp.einsum("bqsc,ch->bqsh", grouped, p["w1"]) * p["s1"] + p["b1"], 0.0)
    h2 = jnp.maximum(jnp.einsum("bqsh,hk->bqsk", h1, p["w2"]) * p["s2"] + p["b2"], 0.0)
    return jnp.transpose(jnp.max(h2, axis=2), (0, 2, 1))   # (B, H2, N)


# --------------------------------- main -------------------------------------

if __name__ == "__main__":
    B, N, nsample, seed_feat_dim = 2, 16, 16, 29   # Cin = 3 + 29 = 32
    key = jax.random.PRNGKey(0)
    k_xyz, k_feat, k_rot, k_par = jax.random.split(key, 4)

    seed_xyz = jax.random.uniform(k_xyz, (B, N, 3), jnp.float32) * 0.2      # small scene
    seed_features = jax.random.normal(k_feat, (B, seed_feat_dim, N), jnp.float32)
    # rotation-ish matrices per seed point (gripper viewpoint rotations)
    rnd = jax.random.normal(k_rot, (B, N, 3, 3), jnp.float32)
    vp_rot, _ = jnp.linalg.qr(rnd)

    params = make_cloudcrop_params(k_par, seed_feat_dim, hidden=(256, 256))

    out = cloudcrop_forward(params, seed_xyz, seed_features, vp_rot,
                            nsample=nsample, cylinder_radius=0.05,
                            hmin=-0.02, hmax=0.04)
    out = jax.block_until_ready(out)
    assert out.shape == (B, 256, N), out.shape

    # correctness check against a pure-JAX f32 reference of the fused MLP+pool
    grouped_ref = cylinder_query_and_group(
        seed_xyz, seed_features, vp_rot,
        radius=0.05, hmin=-0.02, hmax=0.04, nsample=nsample)
    ref = jax.block_until_ready(cloudcrop_mlp_ref(grouped_ref, params))
    # bf16 matmul inputs + BN-scale folding -> loosened tolerance vs f32 ref
    err = float(jnp.max(jnp.abs(out - ref)))
    assert err < 5e-2, err

    print("KERNEL_OK")
</pallas_src>

<mosaic_0001>
module attributes {stable_mosaic.version = 11 : i64} {
  func.func @cloudcrop_mlp_kernel(%arg0: i32, %arg1: memref<256x32xbf16, #tpu.memory_space<vmem>>, %arg2: memref<32x256xbf16, #tpu.memory_space<vmem>>, %arg3: memref<1x256xf32, #tpu.memory_space<vmem>>, %arg4: memref<256x256xbf16, #tpu.memory_space<vmem>>, %arg5: memref<1x256xf32, #tpu.memory_space<vmem>>, %arg6: memref<16x256xf32, #tpu.memory_space<vmem>>) attributes {dimension_semantics = [#tpu.dimension_semantics<parallel>], iteration_bounds = array<i64: 2>, scalar_prefetch = 0 : i64, scratch_operands = 0 : i64, tpu.core_type = #tpu.core_type<tc>, window_params = [{transform_indices = @transform_0, window_bounds = array<i64: 256, 32>}, {pipeline_mode = #tpu.pipeline_mode<synchronous>, transform_indices = @transform_1, window_bounds = array<i64: 32, 256>}, {pipeline_mode = #tpu.pipeline_mode<synchronous>, transform_indices = @transform_2, window_bounds = array<i64: 1, 256>}, {pipeline_mode = #tpu.pipeline_mode<synchronous>, transform_indices = @transform_3, window_bounds = array<i64: 256, 256>}, {pipeline_mode = #tpu.pipeline_mode<synchronous>, transform_indices = @transform_4, window_bounds = array<i64: 1, 256>}, {transform_indices = @transform_5, window_bounds = array<i64: 16, 256>}]} {
    %c0 = arith.constant 0 : index
    %c0_0 = arith.constant 0 : index
    %0 = vector.load %arg1[%c0, %c0_0] : memref<256x32xbf16, #tpu.memory_space<vmem>>, vector<256x32xbf16>
    %c0_1 = arith.constant 0 : index
    %c0_2 = arith.constant 0 : index
    %1 = vector.load %arg2[%c0_1, %c0_2] : memref<32x256xbf16, #tpu.memory_space<vmem>>, vector<32x256xbf16>
    %cst = arith.constant dense<0.000000e+00> : vector<256x256xf32>
    %2 = tpu.matmul %0, %1, %cst {dimension_numbers = #tpu.dot_dimension_numbers<[1], [0], [0], [1], [0, 0, 1, 1], [], []>} : vector<256x32xbf16>, vector<32x256xbf16>, vector<256x256xf32> -> vector<256x256xf32>
    %c0_3 = arith.constant 0 : index
    %c0_4 = arith.constant 0 : index
    %3 = vector.load %arg3[%c0_3, %c0_4] : memref<1x256xf32, #tpu.memory_space<vmem>>, vector<1x256xf32>
    %4 = vector.broadcast %3 : vector<1x256xf32> to vector<256x256xf32>
    %5 = arith.addf %2, %4 : vector<256x256xf32>
    %cst_5 = arith.constant 0.000000e+00 : f32
    %6 = vector.broadcast %cst_5 : f32 to vector<256x256xf32>
    %7 = arith.maximumf %5, %6 : vector<256x256xf32>
    %8 = arith.truncf %7 : vector<256x256xf32> to vector<256x256xbf16>
    %c0_6 = arith.constant 0 : index
    %c0_7 = arith.constant 0 : index
    %9 = vector.load %arg4[%c0_6, %c0_7] : memref<256x256xbf16, #tpu.memory_space<vmem>>, vector<256x256xbf16>
    %cst_8 = arith.constant dense<0.000000e+00> : vector<256x256xf32>
    %10 = tpu.matmul %8, %9, %cst_8 {dimension_numbers = #tpu.dot_dimension_numbers<[1], [0], [0], [1], [0, 0, 1, 1], [], []>} : vector<256x256xbf16>, vector<256x256xbf16>, vector<256x256xf32> -> vector<256x256xf32>
    %c0_9 = arith.constant 0 : index
    %c0_10 = arith.constant 0 : index
    %11 = vector.load %arg5[%c0_9, %c0_10] : memref<1x256xf32, #tpu.memory_space<vmem>>, vector<1x256xf32>
    %12 = vector.broadcast %11 : vector<1x256xf32> to vector<256x256xf32>
    %13 = arith.addf %10, %12 : vector<256x256xf32>
    %cst_11 = arith.constant 0.000000e+00 : f32
    %14 = vector.broadcast %cst_11 : f32 to vector<256x256xf32>
    %15 = arith.maximumf %13, %14 : vector<256x256xf32>
    %16 = vector.shape_cast %15 : vector<256x256xf32> to vector<16x16x256xf32>
    %cst_12 = arith.constant dense<0xFF800000> : vector<16x256xf32>
    %17 = vector.multi_reduction <maximumf>, %16, %cst_12 [1] : vector<16x16x256xf32> to vector<16x256xf32>
    %c0_13 = arith.constant 0 : index
    %c0_14 = arith.constant 0 : index
    %18 = vector.load %arg6[%c0_13, %c0_14] : memref<16x256xf32, #tpu.memory_space<vmem>>, vector<16x256xf32>
    tpu.vector_store %arg6[%c0_13, %c0_14], %17 {strides = array<i32>} : memref<16x256xf32, #tpu.memory_space<vmem>>, vector<16x256xf32>,
    return
  }
  func.func @transform_0(%arg0: i32) -> (i32, i32) {
    %c0_i32 = arith.constant 0 : i32
    %c0_i32_0 = arith.constant 0 : i32
    return %arg0, %c0_i32 : i32, i32
  }
  func.func @transform_1(%arg0: i32) -> (i32, i32) {
    %c0_i32 = arith.constant 0 : i32
    %c0_i32_0 = arith.constant 0 : i32
    %c0_i32_1 = arith.constant 0 : i32
    return %c0_i32, %c0_i32_0 : i32, i32
  }
  func.func @transform_2(%arg0: i32) -> (i32, i32) {
    %c0_i32 = arith.constant 0 : i32
    %c0_i32_0 = arith.constant 0 : i32
    %c0_i32_1 = arith.constant 0 : i32
    return %c0_i32, %c0_i32_0 : i32, i32
  }
  func.func @transform_3(%arg0: i32) -> (i32, i32) {
    %c0_i32 = arith.constant 0 : i32
    %c0_i32_0 = arith.constant 0 : i32
    %c0_i32_1 = arith.constant 0 : i32
    return %c0_i32, %c0_i32_0 : i32, i32
  }
  func.func @transform_4(%arg0: i32) -> (i32, i32) {
    %c0_i32 = arith.constant 0 : i32
    %c0_i32_0 = arith.constant 0 : i32
    %c0_i32_1 = arith.constant 0 : i32
    return %c0_i32, %c0_i32_0 : i32, i32
  }
  func.func @transform_5(%arg0: i32) -> (i32, i32) {
    %c0_i32 = arith.constant 0 : i32
    %c0_i32_0 = arith.constant 0 : i32
    return %arg0, %c0_i32 : i32, i32
  }
}

</mosaic_0001>

<bundles_post_ra>
// kernel: tpu_custom_call.1
= control target key start
LH: loop header
LB: loop body
LE: loop exit
PB: predicated region body
PF: predicated region fallthrough
CT: control target
= control target key end

     0   :  { %10 = vsyncpa [#allocation3], 0  ;;  %s2328_s0 = inlined_call_operand.vmem [shape: bf16[512,32], index: 0, kind: input, shape index: {}]   ;;  %s2329_s1 = inlined_call_operand.vmem [shape: bf16[32,256], index: 1, kind: input, shape index: {}]   ;;  %s2330_s2 = inlined_call_operand.vmem [shape: f32[1,256], index: 2, kind: input, shape index: {}]   ;;  %s2331_s3 = inlined_call_operand.vmem [shape: bf16[256,256], index: 3, kind: input, shape index: {}]   ;;  %s2332_s4 = inlined_call_operand.vmem [shape: f32[1,256], index: 4, kind: input, shape index: {}]   ;;  %s2333_s5 = inlined_call_operand.hbm [shape: f32[32,256], index: 5, kind: output, shape index: {}]  }
   0x1   :  { %12 = vsyncpa [#allocation3 + $0x1], 0  ;;  %s1875_s18 = smov 0   ;;  %s1877_s19 = smov 0  }
   0x2   :  { %s1879_s20 = smov 0   ;;  %s1881_s21 = smov 0  }
   0x3 LB: > { %s1896_s22 = sadd.s32 4294967295, %s1839_s21   ;;  %s1550_s23 = sadd.s32 4294967294, %s1839_s21   ;;  %s1839_s21 = sphi %s1881_s21, %s2339_s21   ;;  %s1835_s20 = sphi %s1879_s20, %s2338_s20   ;;  %s1831_s19 = sphi %s1877_s19, %s2337_s19   ;;  %s1827_s18 = sphi %s1875_s18, %s2336_s18  }
   0x4   : > { %s1900_s24 = sadd.s32 1, %s1839_s21   ;;  %s135_s25 = sadd.s32 1, %s1835_s20 }
   0x5   : > { %s132_s26 = ssub.s32 %s1839_s21, %s1900_s24  ;;  %p145_p0 = scmp.ne.s32.totalorder %s1835_s20, %s1831_s19 }
   0x6   : > { %p133_p1 = scmp.eq.s32.totalorder %s132_s26, 0  ;;  %p146_p2 = scmp.eq.s32.totalorder %s1896_s22, 1 }
   0x7   : > { %p151_p3 = scmp.ne.s32.totalorder %s1831_s19, %s1827_s18  ;;  %p152_p4 = scmp.eq.s32.totalorder %s1550_s23, 1 }
   0x8   : > { %s1911_s27 = scalar_select %p133_p1, %s1835_s20, %s135_s25  }
   0x9   : > { %p1913_p5 = por %p146_p2, %p145_p0  ;;  %p1917_p6 = por %p152_p4, %p151_p3 }
   0xa   : > { %p1553_p7 = scmp.ge.s32.totalorder %s1839_s21, 1  ;;  %p191_p8 = scmp.lt.s32.totalorder %s1839_s21, 3 }
   0xc   : > { %p192_p9 = pnand %p1553_p7, %p191_p8 }
   0xd   : > { %v1707_v0 = vld [vmem:[%s2329_s1 + $0x4] ss:$8 sps:$4 sm:$0xff] (!%p192_p9)   ;;  %s1555_s7 = sshll.u32 (!%p192_p9), %s1896_s22, 5  ;;  %v1709_v1 = vld [vmem:[%s2329_s1] ss:$8 sps:$4 sm:$0xff] (!%p192_p9)   ;;  %v1841_v2 = vmov (!%p192_p9), 0   ;;  %v265_v53 = vlaneseq (!%p192_p9) }
   0xe   : > { %195 = sbr.rel (%p192_p9) target bundleno = 616 (0x268), region = 40  ;;  %456 = vmatprep.mubr.bf16.mxu0 (!%p192_p9), %v1841_v2  ;;  %p220_p10 = scmp.lt.s32.totalorder (!%p192_p9), %s1555_s7, 63  ;;  %424 = vmatprep.subr.bf16.mxu0 (!%p192_p9), %v1707_v0  ;;  %v1710_v3 = vld [vmem:[%s2329_s1 + $0x14] ss:$8 sps:$4 sm:$0xff] (!%p192_p9)   ;;  %v1712_v4 = vld [vmem:[%s2329_s1 + $0x10] ss:$8 sps:$4 sm:$0xff] (!%p192_p9)  }
   0xf   : > { %425 = vmatpush1.bf16.msra.mxu0 (!%p192_p9), %v1709_v1  ;;  %v1731_v5 = vld [vmem:[%s2331_s3 + $0x4] ss:$8 sps:$4 sm:$0xff] (!%p192_p9)   ;;  %v1729_v6 = vld [vmem:[%s2331_s3] ss:$8 sps:$4 sm:$0xff] (!%p192_p9)   ;;  %v1734_v7 = vld [vmem:[%s2331_s3 + $0x14] ss:$8 sps:$4 sm:$0xff] (!%p192_p9)  }
  0x10   : > { %426 = vmatprep.subr.bf16.mxu0 (!%p192_p9), %v1710_v3  ;;  %1633 = vmatprep.subr.bf16.mxu1 (!%p192_p9), %v1731_v5  ;;  %vm375_vm0 = vcmask (!%p192_p9), 261120   ;;  %v1732_v9 = vld [vmem:[%s2331_s3 + $0x10] ss:$8 sps:$4 sm:$0xff] (!%p192_p9)   ;;  %v1737_v10 = vld [vmem:[%s2331_s3 + $0x24] ss:$8 sps:$4 sm:$0xff] (!%p192_p9)   ;;  %v2085_v54 = vshrl.u32 (!%p192_p9), %v265_v53, 7 }
  0x11   : > { %1649 = vmatpush1.bf16.msra.mxu1 (!%p192_p9), %v1729_v6  ;;  %v1735_v11 = vld [vmem:[%s2331_s3 + $0x20] ss:$8 sps:$4 sm:$0xff] (!%p192_p9)   ;;  %v1738_v14 = vld [vmem:[%s2331_s3 + $0x30] ss:$8 sps:$4 sm:$0xff] (!%p192_p9)   ;;  %v1740_v15 = vld [vmem:[%s2331_s3 + $0x34] ss:$8 sps:$4 sm:$0xff] (!%p192_p9)  }
  0x12   : > { %1634 = vmatprep.subr.bf16.mxu1 (!%p192_p9), %v1734_v7  ;;  %v1743_v16 = vld [vmem:[%s2331_s3 + $0x44] ss:$8 sps:$4 sm:$0xff] (!%p192_p9)   ;;  %v1741_v17 = vld [vmem:[%s2331_s3 + $0x40] ss:$8 sps:$4 sm:$0xff] (!%p192_p9)   ;;  %v1746_v18 = vld [vmem:[%s2331_s3 + $0x54] ss:$8 sps:$4 sm:$0xff] (!%p192_p9)  }
  0x13   : > { %427 = vmatpush1.bf16.msra.mxu0 (!%p192_p9), %v1712_v4  ;;  %v1744_v20 = vld [vmem:[%s2331_s3 + $0x50] ss:$8 sps:$4 sm:$0xff] (!%p192_p9)   ;;  %v1749_v21 = vld [vmem:[%s2331_s3 + $0x64] ss:$8 sps:$4 sm:$0xff] (!%p192_p9)   ;;  %v1747_v22 = vld [vmem:[%s2331_s3 + $0x60] ss:$8 sps:$4 sm:$0xff] (!%p192_p9)  }
  0x14   : > { %917 = vmatprep.subr.bf16.mxu0 (!%p192_p9), %v1731_v5  ;;  %v1752_v23 = vld [vmem:[%s2331_s3 + $0x74] ss:$8 sps:$4 sm:$0xff] (!%p192_p9)   ;;  %v1750_v25 = vld [vmem:[%s2331_s3 + $0x70] ss:$8 sps:$4 sm:$0xff] (!%p192_p9)   ;;  %v1755_v26 = vld [vmem:[%s2331_s3 + $0x84] ss:$8 sps:$4 sm:$0xff] (!%p192_p9)  }
  0x15   : > { %s2341_s7 = smov (!%p220_p10, %s1555_s7), 63  ;;  %1650 = vmatpush1.bf16.msra.mxu1 %v1732_v9  ;;  %v1753_v27 = vld [vmem:[%s2331_s3 + $0x80] ss:$8 sps:$4 sm:$0xff]   ;;  %v1758_v28 = vld [vmem:[%s2331_s3 + $0x94] ss:$8 sps:$4 sm:$0xff]   ;;  %v267_v55 = vsub.s32 0, %v2085_v54 }
  0x16   : > { %s1556_s23 = sshll.u32 %s2341_s7, 2  ;;  %1635 = vmatprep.subr.bf16.mxu1 %v1737_v10  ;;  %v1756_v30 = vld [vmem:[%s2331_s3 + $0x90] ss:$8 sps:$4 sm:$0xff]   ;;  %v1761_v31 = vld [vmem:[%s2331_s3 + $0xa4] ss:$8 sps:$4 sm:$0xff]   ;;  %v271_v57 = vsub.s32 1, %v2085_v54 }
  0x17   : > { %s1949_s8 = scalar_lea.vmem %s2328_s0, %s1556_s23  ;;  %v1759_v32 = vld [vmem:[%s2331_s3 + $0xa0] ss:$8 sps:$4 sm:$0xff]   ;;  %v1764_v33 = vld [vmem:[%s2331_s3 + $0xb4] ss:$8 sps:$4 sm:$0xff]   ;;  %v1762_v35 = vld [vmem:[%s2331_s3 + $0xb0] ss:$8 sps:$4 sm:$0xff]  }
  0x18   : > { %v1713_v8 = vld [vmem:[%s1949_s8] sm:$0xff]   ;;  %v1714_v12 = vld [vmem:[%s1949_s8 + $0x8] sm:$0xff]   ;;  %v1715_v13 = vld [vmem:[%s1949_s8 + $0x10] sm:$0xff]   ;;  %vm1430_vm1 = vcmask 1041409   ;;  %vm1432_vm2 = vcmask 1042434   ;;  %vm1434_vm3 = vcmask 1043459  }
  0x19   : > { %1577 = vmatmul.mubr.msk.bf16.vlgmr.msra.gmra.mrb[0].mxu0 %vm375_vm0, %v1713_v8  ;;  %1651 = vmatpush1.bf16.msra.mxu1 %v1735_v11  ;;  %v1716_v19 = vld [vmem:[%s1949_s8 + $0x18] sm:$0xff]   ;;  %v1717_v24 = vld [vmem:[%s1949_s8 + $0x20] sm:$0xff]   ;;  %v1718_v29 = vld [vmem:[%s1949_s8 + $0x28] sm:$0xff]   ;;  %vm1436_vm4 = vcmask 1044484   ;;  %vm1438_vm5 = vcmask 1045509   ;;  %vm1440_vm6 = vcmask 1046534  }
  0x1a   : > { %466 = vmatprep.mubr.bf16.mxu0 %v1841_v2  ;;  %918 = vmatpush1.bf16.msra.mxu0 %v1729_v6  ;;  %v1719_v34 = vld [vmem:[%s1949_s8 + $0x30] sm:$0xff]   ;;  %v1767_v36 = vld [vmem:[%s2331_s3 + $0xc4] ss:$8 sps:$4 sm:$0xff]   ;;  %v1765_v37 = vld [vmem:[%s2331_s3 + $0xc0] ss:$8 sps:$4 sm:$0xff]   ;;  %s216_s7 = sand.u32 1, %s1831_s19  }
  0x1b   : > { %919 = vmatprep.subr.bf16.mxu0 %v1734_v7  ;;  %1636 = vmatprep.subr.bf16.mxu1 %v1740_v15  ;;  %v1770_v38 = vld [vmem:[%s2331_s3 + $0xd4] ss:$8 sps:$4 sm:$0xff]   ;;  %v1768_v40 = vld [vmem:[%s2331_s3 + $0xd0] ss:$8 sps:$4 sm:$0xff]   ;;  %v1721_v41 = vld [vmem:[%s1949_s8 + $0x40] sm:$0xff]   ;;  %s1554_s10 = sshll.u32 %s216_s7, 5 }
  0x1c   : > { %v1720_v39 = vld [vmem:[%s1949_s8 + $0x38] sm:$0xff]   ;;  %v1722_v42 = vld [vmem:[%s1949_s8 + $0x48] sm:$0xff]   ;;  %v1723_v43 = vld [vmem:[%s1949_s8 + $0x50] sm:$0xff]   ;;  %vm1442_vm7 = vcmask 1047559   ;;  %s2231_s11 = scalar_lea.vmem [#allocation2], %s1554_s10  ;;  %s1632_s12 = sshll.u32 %s1896_s22, 9 }
  0x1d   : > { %1652 = vmatpush1.bf16.msra.mxu1 %v1738_v14  ;;  %v1724_v44 = vld [vmem:[%s1949_s8 + $0x58] sm:$0xff]   ;;  %v1773_v45 = vld [vmem:[%s2331_s3 + $0xe4] ss:$8 sps:$4 sm:$0xff]   ;;  %v1771_v46 = vld [vmem:[%s2331_s3 + $0xe0] ss:$8 sps:$4 sm:$0xff]   ;;  %s1488_s13 = sshll.u32 %s2231_s11, 4  ;;  %s2277_s16 = scalar_lea.hbm %s2333_s5, %s1632_s12  ;;  %s2279_s13 = int_to_ptr.vmem [resolvable:$true] %s1488_s13 }
  0x1e   : > { %920 = vmatpush1.bf16.msra.mxu0 %v1732_v9  ;;  %1637 = vmatprep.subr.bf16.mxu1 %v1743_v16  ;;  %v1776_v47 = vld [vmem:[%s2331_s3 + $0xf4] ss:$8 sps:$4 sm:$0xff]   ;;  %v1774_v48 = vld [vmem:[%s2331_s3 + $0xf0] ss:$8 sps:$4 sm:$0xff]   ;;  %v1725_v49 = vld [vmem:[%s1949_s8 + $0x60] sm:$0xff]   ;;  %s2287_s22 = scalar_lea.sflag [#allocation3], %s216_s7 }
  0x1f   : > { %921 = vmatprep.subr.bf16.mxu0 %v1737_v10  ;;  %v1726_v50 = vld [vmem:[%s1949_s8 + $0x68] sm:$0xff]   ;;  %v1727_v51 = vld [vmem:[%s1949_s8 + $0x70] sm:$0xff]   ;;  %v1728_v52 = vld [vmem:[%s1949_s8 + $0x78] sm:$0xff]   ;;  %s1777_s17 = scalar_lea.vmem %s2279_s13, 512  ;;  %s1842_s23 = smov [#allocation2]  }
  0x20   : > { %v263_v56 = vld [vmem:[%s2330_s2] sm:$0x3]  ;;  %p1778_p11 = scmp.ne.s32.totalorder %s2279_s13, %s1777_s17  ;;  %s1781_s25 = sshll.u32 %s1842_s23, 4  ;;  %s1782_s25 = int_to_ptr.vmem [resolvable:$false] %s1781_s25 }
  0x21   : > { %1578 = vmatmul.mubr.msk.bf16.gmra.mrb[4].mxu0 %vm375_vm0, %v1714_v12  ;;  %1653 = vmatpush1.bf16.msra.mxu1 %v1741_v17  ;;  %v2094_v58 = vrot.slane %v263_v56, %v267_v55  ;;  %v2098_v59 = vrot.slane %v263_v56, %v271_v57  ;;  %s1783_s26 = scalar_lea.vmem %s1782_s25, 1024  ;;  %p1784_p0 = scmp.lt.s32.totalorder %s2279_s13, %s1782_s25 }
  0x22   : > { %476 = vmatprep.mubr.bf16.mxu0 %v1841_v2  ;;  %922 = vmatpush1.bf16.msra.mxu0 %v1735_v11  ;;  %p1779_p12 = pnand %p1778_p11, %p1913_p5  ;;  %p1785_p1 = scmp.lt.s32.totalorder %s1783_s26, %s1777_s17 }
  0x23   : > { %923 = vmatprep.subr.bf16.mxu0 %v1740_v15  ;;  %1638 = vmatprep.subr.bf16.mxu1 %v1746_v18 }
  0x24   : > { %p1780_p13 = pneg %p1779_p12  ;;  %p1786_p2 = por %p1785_p1, %p1784_p0 }
  0x25   : > { %1654 = vmatpush1.bf16.msra.mxu1 %v1744_v20 }
  0x26   : > { %924 = vmatpush1.bf16.msra.mxu0 %v1738_v14  ;;  %1639 = vmatprep.subr.bf16.mxu1 %v1749_v21  ;;  %p1787_p3 = pnand %p1786_p2, %p1780_p13 }
  0x27   : > { %925 = vmatprep.subr.bf16.mxu0 %v1743_v16 }
  0x29   : > { %1579 = vmatmul.mubr.msk.bf16.gmra.mrb[8].mxu0 %vm375_vm0, %v1715_v13  ;;  %1655 = vmatpush1.bf16.msra.mxu1 %v1747_v22 }
  0x2a   : > { %486 = vmatprep.mubr.bf16.mxu0 %v1841_v2  ;;  %926 = vmatpush1.bf16.msra.mxu0 %v1741_v17 }
  0x2b   : > { %927 = vmatprep.subr.bf16.mxu0 %v1746_v18  ;;  %1640 = vmatprep.subr.bf16.mxu1 %v1752_v23 }
  0x2d   : > { %1656 = vmatpush1.bf16.msra.mxu1 %v1750_v25 }
  0x2e   : > { %928 = vmatpush1.bf16.msra.mxu0 %v1744_v20  ;;  %1641 = vmatprep.subr.bf16.mxu1 %v1755_v26 }
  0x2f   : > { %929 = vmatprep.subr.bf16.mxu0 %v1749_v21 }
  0x31   : > { %1580 = vmatmul.mubr.msk.bf16.gmra.mrb[12].mxu0 %vm375_vm0, %v1716_v19  ;;  %1657 = vmatpush1.bf16.msra.mxu1 %v1753_v27 }
  0x32   : > { %496 = vmatprep.mubr.bf16.mxu0 %v1841_v2  ;;  %930 = vmatpush1.bf16.msra.mxu0 %v1747_v22 }
  0x33   : > { %931 = vmatprep.subr.bf16.mxu0 %v1752_v23  ;;  %1642 = vmatprep.subr.bf16.mxu1 %v1758_v28 }
  0x35   : > { %1658 = vmatpush1.bf16.msra.mxu1 %v1756_v30 }
  0x36   : > { %932 = vmatpush1.bf16.msra.mxu0 %v1750_v25  ;;  %1643 = vmatprep.subr.bf16.mxu1 %v1761_v31 }
  0x37   : > { %933 = vmatprep.subr.bf16.mxu0 %v1755_v26 }
  0x39   : > { %1581 = vmatmul.mubr.msk.bf16.gmra.mrb[16].mxu0 %vm375_vm0, %v1717_v24  ;;  %1659 = vmatpush1.bf16.msra.mxu1 %v1759_v32 }
  0x3a   : > { %506 = vmatprep.mubr.bf16.mxu0 %v1841_v2  ;;  %934 = vmatpush1.bf16.msra.mxu0 %v1753_v27 }
  0x3b   : > { %935 = vmatprep.subr.bf16.mxu0 %v1758_v28  ;;  %1644 = vmatprep.subr.bf16.mxu1 %v1764_v33 }
  0x3d   : > { %1660 = vmatpush1.bf16.msra.mxu1 %v1762_v35 }
  0x3e   : > { %936 = vmatpush1.bf16.msra.mxu0 %v1756_v30  ;;  %1645 = vmatprep.subr.bf16.mxu1 %v1767_v36 }
  0x3f   : > { %937 = vmatprep.subr.bf16.mxu0 %v1761_v31 }
  0x41   : > { %1582 = vmatmul.mubr.msk.bf16.gmra.mrb[20].mxu0 %vm375_vm0, %v1718_v29  ;;  %1661 = vmatpush1.bf16.msra.mxu1 %v1765_v37 }
  0x42   : > { %516 = vmatprep.mubr.bf16.mxu0 %v1841_v2  ;;  %938 = vmatpush1.bf16.msra.mxu0 %v1759_v32 }
  0x43   : > { %939 = vmatprep.subr.bf16.mxu0 %v1764_v33  ;;  %1646 = vmatprep.subr.bf16.mxu1 %v1770_v38 }
  0x45   : > { %1662 = vmatpush1.bf16.msra.mxu1 %v1768_v40 }
  0x46   : > { %940 = vmatpush1.bf16.msra.mxu0 %v1762_v35  ;;  %1647 = vmatprep.subr.bf16.mxu1 %v1773_v45 }
  0x47   : > { %941 = vmatprep.subr.bf16.mxu0 %v1767_v36 }
  0x49   : > { %1583 = vmatmul.mubr.msk.bf16.gmra.mrb[24].mxu0 %vm375_vm0, %v1719_v34  ;;  %1663 = vmatpush1.bf16.msra.mxu1 %v1771_v46 }
  0x4a   : > { %526 = vmatprep.mubr.bf16.mxu0 %v1841_v2  ;;  %942 = vmatpush1.bf16.msra.mxu0 %v1765_v37 }
  0x4b   : > { %943 = vmatprep.subr.bf16.mxu0 %v1770_v38  ;;  %1648 = vmatprep.subr.bf16.mxu1 %v1776_v47 }
  0x4d   : > { %1664 = vmatpush1.bf16.msra.mxu1 %v1774_v48 }
  0x4e   : > { %944 = vmatpush1.bf16.msra.mxu0 %v1768_v40 }
  0x4f   : > { %945 = vmatprep.subr.bf16.mxu0 %v1773_v45 }
  0x51   : > { %1584 = vmatmul.mubr.msk.bf16.gmra.mrb[28].mxu0 %vm375_vm0, %v1720_v39 }
  0x52   : > { %536 = vmatprep.mubr.bf16.mxu0 %v1841_v2  ;;  %946 = vmatpush1.bf16.msra.mxu0 %v1771_v46 }
  0x53   : > { %947 = vmatprep.subr.bf16.mxu0 %v1776_v47 }
  0x56   : > { %948 = vmatpush1.bf16.msra.mxu0 %v1774_v48 }
  0x59   : > { %1585 = vmatmul.mubr.msk.bf16.gmra.mrb[32].mxu0 %vm375_vm0, %v1721_v41 }
  0x5a   : > { %546 = vmatprep.mubr.bf16.mxu0 %v1841_v2 }
  0x61   : > { %1586 = vmatmul.mubr.msk.bf16.gmra.mrb[36].mxu0 %vm375_vm0, %v1722_v42 }
  0x62   : > { %556 = vmatprep.mubr.bf16.mxu0 %v1841_v2 }
  0x69   : > { %1587 = vmatmul.mubr.msk.bf16.gmra.mrb[40].mxu0 %vm375_vm0, %v1723_v43 }
  0x6a   : > { %566 = vmatprep.mubr.bf16.mxu0 %v1841_v2 }
  0x71   : > { %1588 = vmatmul.mubr.msk.bf16.gmra.mrb[44].mxu0 %vm375_vm0, %v1724_v44 }
  0x72   : > { %576 = vmatprep.mubr.bf16.mxu0 %v1841_v2 }
  0x79   : > { %1589 = vmatmul.mubr.msk.bf16.gmra.mrb[48].mxu0 %vm375_vm0, %v1725_v49 }
  0x7a   : > { %586 = vmatprep.mubr.bf16.mxu0 %v1841_v2 }
  0x81   : > { %1590 = vmatmul.mubr.msk.bf16.gmra.mrb[52].mxu0 %vm375_vm0, %v1726_v50 }
  0x82   : > { %596 = vmatprep.mubr.bf16.mxu0 %v1841_v2 }
  0x89   : > { %1591 = vmatmul.mubr.msk.bf16.gmra.mrb[56].mxu0 %vm375_vm0, %v1727_v51 }
  0x8a   : > { %606 = vmatprep.mubr.bf16.mxu0 %v1841_v2 }
  0x91   : > { %1592 = vmatmul.mubr.msk.bf16.gmra.mrb[60].mxu0 %vm375_vm0, %v1728_v52 }
  0xec   : > { %v458_v60 = vpop.f32.mrb[0].mxu0 }
  0xed   : > { %v459_v61 = vadd.f32 %v458_v60, %v2094_v58  ;;  %v460_v62 = vpop.f32.mrb[1].mxu0 }
  0xee   : > { %v461_v63 = vadd.f32 %v460_v62, %v2098_v59  ;;  %v462_v0 = vpop.f32.mrb[2].mxu0 }
  0xef   : > { %v463_v1 = vadd.f32 %v462_v0, %v2094_v58  ;;  %v464_v2 = vpop.f32.mrb[3].mxu0  ;;  %v617_v4 = vmax.f32 %v459_v61, 0.0 }
  0xf0   : > { %v465_v3 = vadd.f32 %v464_v2, %v2098_v59  ;;  %v618_v6 = vmax.f32 %v461_v63, 0.0 }
  0xf1   : > { %v619_v5 = vmax.f32 %v463_v1, 0.0 }
  0xf2   : > { %v620_v7 = vmax.f32 %v465_v3, 0.0 }
  0xf3   : > { %v681_v8 = vpack.c.bf16 %v619_v5, %v617_v4 }
  0xf4   : > { %v682_v9 = vpack.c.bf16 %v620_v7, %v618_v6  ;;  %v468_v10 = vpop.f32.mrb[4].mxu0 }
  0xf5   : > { %v469_v11 = vadd.f32 %v468_v10, %v2094_v58  ;;  %v470_v12 = vpop.f32.mrb[5].mxu0 }
  0xf6   : > { %v471_v13 = vadd.f32 %v470_v12, %v2098_v59  ;;  %v472_v14 = vpop.f32.mrb[6].mxu0  ;;  %949 = vmatprep.mubr.bf16.mxu0 %v682_v9 }
  0xf7   : > { %v473_v15 = vadd.f32 %v472_v14, %v2094_v58  ;;  %v474_v16 = vpop.f32.mrb[7].mxu0  ;;  %950 = vmatmul.mubr.bf16.vlgmr.msra.gmra.mrb[64].mxu0 %v681_v8  ;;  %v621_v18 = vmax.f32 %v469_v11, 0.0 }
  0xf8   : > { %v475_v17 = vadd.f32 %v474_v16, %v2098_v59  ;;  %v622_v20 = vmax.f32 %v471_v13, 0.0 }
  0xf9   : > { %v623_v19 = vmax.f32 %v473_v15, 0.0 }
  0xfa   : > { %v624_v21 = vmax.f32 %v475_v17, 0.0 }
  0xfb   : > { %v683_v22 = vpack.c.bf16 %v623_v19, %v621_v18 }
  0xfc   : > { %v684_v23 = vpack.c.bf16 %v624_v21, %v622_v20  ;;  %v478_v24 = vpop.f32.mrb[8].mxu0 }
  0xfd   : > { %v479_v25 = vadd.f32 %v478_v24, %v2094_v58  ;;  %v480_v26 = vpop.f32.mrb[9].mxu0 }
  0xfe   : > { %v481_v27 = vadd.f32 %v480_v26, %v2098_v59  ;;  %v482_v28 = vpop.f32.mrb[10].mxu0  ;;  %959 = vmatprep.mubr.bf16.mxu0 %v684_v23 }
  0xff   : > { %v483_v29 = vadd.f32 %v482_v28, %v2094_v58  ;;  %v484_v30 = vpop.f32.mrb[11].mxu0  ;;  %960 = vmatmul.mubr.bf16.gmra.mrb[68].mxu0 %v683_v22  ;;  %v625_v32 = vmax.f32 %v479_v25, 0.0 }
 0x100   : > { %v485_v31 = vadd.f32 %v484_v30, %v2098_v59  ;;  %v626_v34 = vmax.f32 %v481_v27, 0.0 }
 0x101   : > { %v627_v33 = vmax.f32 %v483_v29, 0.0 }
 0x102   : > { %v628_v35 = vmax.f32 %v485_v31, 0.0 }
 0x103   : > { %v685_v36 = vpack.c.bf16 %v627_v33, %v625_v32 }
 0x104   : > { %v686_v37 = vpack.c.bf16 %v628_v35, %v626_v34  ;;  %v488_v38 = vpop.f32.mrb[12].mxu0 }
 0x105   : > { %v489_v39 = vadd.f32 %v488_v38, %v2094_v58  ;;  %v490_v40 = vpop.f32.mrb[13].mxu0 }
 0x106   : > { %v491_v41 = vadd.f32 %v490_v40, %v2098_v59  ;;  %v492_v42 = vpop.f32.mrb[14].mxu0  ;;  %969 = vmatprep.mubr.bf16.mxu0 %v686_v37 }
 0x107   : > { %v493_v43 = vadd.f32 %v492_v42, %v2094_v58  ;;  %v494_v44 = vpop.f32.mrb[15].mxu0  ;;  %970 = vmatmul.mubr.bf16.gmra.mrb[72].mxu0 %v685_v36  ;;  %v629_v46 = vmax.f32 %v489_v39, 0.0 }
 0x108   : > { %v495_v45 = vadd.f32 %v494_v44, %v2098_v59  ;;  %v630_v48 = vmax.f32 %v491_v41, 0.0 }
 0x109   : > { %v631_v47 = vmax.f32 %v493_v43, 0.0 }
 0x10a   : > { %v632_v49 = vmax.f32 %v495_v45, 0.0 }
 0x10b   : > { %v687_v50 = vpack.c.bf16 %v631_v47, %v629_v46 }
 0x10c   : > { %v498_v51 = vpop.f32.mrb[16].mxu0  ;;  %v688_v52 = vpack.c.bf16 %v632_v49, %v630_v48 }
 0x10d   : > { %v499_v53 = vadd.f32 %v498_v51, %v2094_v58  ;;  %v500_v56 = vpop.f32.mrb[17].mxu0 }
 0x10e   : > { %v501_v60 = vadd.f32 %v500_v56, %v2098_v59  ;;  %v502_v61 = vpop.f32.mrb[18].mxu0  ;;  %979 = vmatprep.mubr.bf16.mxu1 %v688_v52 }
 0x10f   : > { %v503_v62 = vadd.f32 %v502_v61, %v2094_v58  ;;  %v504_v63 = vpop.f32.mrb[19].mxu0  ;;  %980 = vmatmul.mubr.bf16.vlgmr.msra.gmra.mrb[0].mxu1 %v687_v50  ;;  %v633_v1 = vmax.f32 %v499_v53, 0.0 }
 0x110   : > { %v505_v0 = vadd.f32 %v504_v63, %v2098_v59  ;;  %v634_v3 = vmax.f32 %v501_v60, 0.0 }
 0x111   : > { %v635_v2 = vmax.f32 %v503_v62, 0.0 }
 0x112   : > { %v636_v4 = vmax.f32 %v505_v0, 0.0 }
 0x113   : > { %v689_v5 = vpack.c.bf16 %v635_v2, %v633_v1 }
 0x114   : > { %v690_v6 = vpack.c.bf16 %v636_v4, %v634_v3  ;;  %v508_v7 = vpop.f32.mrb[20].mxu0 }
 0x115   : > { %v509_v8 = vadd.f32 %v508_v7, %v2094_v58  ;;  %v510_v9 = vpop.f32.mrb[21].mxu0 }
 0x116   : > { %v511_v10 = vadd.f32 %v510_v9, %v2098_v59  ;;  %v512_v11 = vpop.f32.mrb[22].mxu0  ;;  %989 = vmatprep.mubr.bf16.mxu1 %v690_v6 }
 0x117   : > { %v513_v12 = vadd.f32 %v512_v11, %v2094_v58  ;;  %v514_v13 = vpop.f32.mrb[23].mxu0  ;;  %990 = vmatmul.mubr.bf16.gmra.mrb[4].mxu1 %v689_v5  ;;  %v637_v15 = vmax.f32 %v509_v8, 0.0 }
 0x118   : > { %v515_v14 = vadd.f32 %v514_v13, %v2098_v59  ;;  %v638_v17 = vmax.f32 %v511_v10, 0.0 }
 0x119   : > { %v639_v16 = vmax.f32 %v513_v12, 0.0 }
 0x11a   : > { %v640_v18 = vmax.f32 %v515_v14, 0.0 }
 0x11b   : > { %v691_v19 = vpack.c.bf16 %v639_v16, %v637_v15 }
 0x11c   : > { %v692_v20 = vpack.c.bf16 %v640_v18, %v638_v17  ;;  %v518_v21 = vpop.f32.mrb[24].mxu0 }
 0x11d   : > { %v519_v22 = vadd.f32 %v518_v21, %v2094_v58  ;;  %v520_v23 = vpop.f32.mrb[25].mxu0 }
 0x11e   : > { %v521_v24 = vadd.f32 %v520_v23, %v2098_v59  ;;  %v522_v25 = vpop.f32.mrb[26].mxu0  ;;  %999 = vmatprep.mubr.bf16.mxu1 %v692_v20 }
 0x11f   : > { %v523_v26 = vadd.f32 %v522_v25, %v2094_v58  ;;  %v524_v27 = vpop.f32.mrb[27].mxu0  ;;  %1000 = vmatmul.mubr.bf16.gmra.mrb[8].mxu1 %v691_v19  ;;  %v641_v29 = vmax.f32 %v519_v22, 0.0 }
 0x120   : > { %v525_v28 = vadd.f32 %v524_v27, %v2098_v59  ;;  %v642_v31 = vmax.f32 %v521_v24, 0.0 }
 0x121   : > { %v643_v30 = vmax.f32 %v523_v26, 0.0 }
 0x122   : > { %v644_v32 = vmax.f32 %v525_v28, 0.0 }
 0x123   : > { %v693_v33 = vpack.c.bf16 %v643_v30, %v641_v29 }
 0x124   : > { %v694_v34 = vpack.c.bf16 %v644_v32, %v642_v31  ;;  %v528_v35 = vpop.f32.mrb[28].mxu0 }
 0x125   : > { %v529_v36 = vadd.f32 %v528_v35, %v2094_v58  ;;  %v530_v37 = vpop.f32.mrb[29].mxu0 }
 0x126   : > { %v531_v38 = vadd.f32 %v530_v37, %v2098_v59  ;;  %v532_v39 = vpop.f32.mrb[30].mxu0  ;;  %1009 = vmatprep.mubr.bf16.mxu1 %v694_v34 }
 0x127   : > { %v533_v40 = vadd.f32 %v532_v39, %v2094_v58  ;;  %v534_v41 = vpop.f32.mrb[31].mxu0  ;;  %1010 = vmatmul.mubr.bf16.gmra.mrb[12].mxu1 %v693_v33  ;;  %v645_v43 = vmax.f32 %v529_v36, 0.0 }
 0x128   : > { %v535_v42 = vadd.f32 %v534_v41, %v2098_v59  ;;  %v646_v45 = vmax.f32 %v531_v38, 0.0 }
 0x129   : > { %v647_v44 = vmax.f32 %v533_v40, 0.0 }
 0x12a   : > { %v648_v46 = vmax.f32 %v535_v42, 0.0 }
 0x12b   : > { %v695_v47 = vpack.c.bf16 %v647_v44, %v645_v43 }
 0x12c   : > { %v696_v48 = vpack.c.bf16 %v648_v46, %v646_v45  ;;  %v538_v49 = vpop.f32.mrb[32].mxu0 }
 0x12d   : > { %v539_v50 = vadd.f32 %v538_v49, %v2094_v58  ;;  %v540_v51 = vpop.f32.mrb[33].mxu0 }
 0x12e   : > { %v541_v52 = vadd.f32 %v540_v51, %v2098_v59  ;;  %v542_v53 = vpop.f32.mrb[34].mxu0  ;;  %1019 = vmatprep.mubr.bf16.mxu1 %v696_v48 }
 0x12f   : > { %v543_v56 = vadd.f32 %v542_v53, %v2094_v58  ;;  %v544_v60 = vpop.f32.mrb[35].mxu0  ;;  %1020 = vmatmul.mubr.bf16.gmra.mrb[16].mxu1 %v695_v47  ;;  %v649_v62 = vmax.f32 %v539_v50, 0.0 }
 0x130   : > { %v545_v61 = vadd.f32 %v544_v60, %v2098_v59  ;;  %v650_v0 = vmax.f32 %v541_v52, 0.0 }
 0x131   : > { %v651_v63 = vmax.f32 %v543_v56, 0.0 }
 0x132   : > { %v652_v1 = vmax.f32 %v545_v61, 0.0 }
 0x133   : > { %v697_v2 = vpack.c.bf16 %v651_v63, %v649_v62 }
 0x134   : > { %v698_v3 = vpack.c.bf16 %v652_v1, %v650_v0  ;;  %v548_v4 = vpop.f32.mrb[36].mxu0 }
 0x135   : > { %v549_v5 = vadd.f32 %v548_v4, %v2094_v58  ;;  %v550_v6 = vpop.f32.mrb[37].mxu0 }
 0x136   : > { %v551_v7 = vadd.f32 %v550_v6, %v2098_v59  ;;  %v552_v8 = vpop.f32.mrb[38].mxu0  ;;  %1029 = vmatprep.mubr.bf16.mxu1 %v698_v3 }
 0x137   : > { %v553_v9 = vadd.f32 %v552_v8, %v2094_v58  ;;  %v554_v10 = vpop.f32.mrb[39].mxu0  ;;  %1030 = vmatmul.mubr.bf16.gmra.mrb[20].mxu1 %v697_v2  ;;  %v653_v12 = vmax.f32 %v549_v5, 0.0 }
 0x138   : > { %v555_v11 = vadd.f32 %v554_v10, %v2098_v59  ;;  %v654_v14 = vmax.f32 %v551_v7, 0.0 }
 0x139   : > { %v655_v13 = vmax.f32 %v553_v9, 0.0 }
 0x13a   : > { %v656_v15 = vmax.f32 %v555_v11, 0.0 }
 0x13b   : > { %v699_v16 = vpack.c.bf16 %v655_v13, %v653_v12 }
 0x13c   : > { %v700_v17 = vpack.c.bf16 %v656_v15, %v654_v14  ;;  %v558_v18 = vpop.f32.mrb[40].mxu0 }
 0x13d   : > { %v559_v19 = vadd.f32 %v558_v18, %v2094_v58  ;;  %v560_v20 = vpop.f32.mrb[41].mxu0 }
 0x13e   : > { %v561_v21 = vadd.f32 %v560_v20, %v2098_v59  ;;  %v562_v22 = vpop.f32.mrb[42].mxu0  ;;  %1039 = vmatprep.mubr.bf16.mxu1 %v700_v17 }
 0x13f   : > { %v563_v23 = vadd.f32 %v562_v22, %v2094_v58  ;;  %v564_v24 = vpop.f32.mrb[43].mxu0  ;;  %1040 = vmatmul.mubr.bf16.gmra.mrb[24].mxu1 %v699_v16  ;;  %v657_v26 = vmax.f32 %v559_v19, 0.0 }
 0x140   : > { %v565_v25 = vadd.f32 %v564_v24, %v2098_v59  ;;  %v658_v28 = vmax.f32 %v561_v21, 0.0 }
 0x141   : > { %v659_v27 = vmax.f32 %v563_v23, 0.0 }
 0x142   : > { %v660_v29 = vmax.f32 %v565_v25, 0.0 }
 0x143   : > { %v701_v30 = vpack.c.bf16 %v659_v27, %v657_v26 }
 0x144   : > { %v702_v31 = vpack.c.bf16 %v660_v29, %v658_v28  ;;  %v568_v32 = vpop.f32.mrb[44].mxu0 }
 0x145   : > { %v569_v33 = vadd.f32 %v568_v32, %v2094_v58  ;;  %v570_v34 = vpop.f32.mrb[45].mxu0 }
 0x146   : > { %v571_v35 = vadd.f32 %v570_v34, %v2098_v59  ;;  %v572_v36 = vpop.f32.mrb[46].mxu0  ;;  %1049 = vmatprep.mubr.bf16.mxu1 %v702_v31 }
 0x147   : > { %v573_v37 = vadd.f32 %v572_v36, %v2094_v58  ;;  %v574_v38 = vpop.f32.mrb[47].mxu0  ;;  %1050 = vmatmul.mubr.bf16.gmra.mrb[28].mxu1 %v701_v30  ;;  %v661_v40 = vmax.f32 %v569_v33, 0.0 }
 0x148   : > { %v575_v39 = vadd.f32 %v574_v38, %v2098_v59  ;;  %v662_v42 = vmax.f32 %v571_v35, 0.0 }
 0x149   : > { %v663_v41 = vmax.f32 %v573_v37, 0.0 }
 0x14a   : > { %v664_v43 = vmax.f32 %v575_v39, 0.0 }
 0x14b   : > { %v703_v44 = vpack.c.bf16 %v663_v41, %v661_v40 }
 0x14c   : > { %v704_v45 = vpack.c.bf16 %v664_v43, %v662_v42  ;;  %v578_v46 = vpop.f32.mrb[48].mxu0  ;;  %v745_v43 = vld [vmem:[%s2332_s4] sm:$0x3] }
 0x14d   : > { %v579_v47 = vadd.f32 %v578_v46, %v2094_v58  ;;  %v580_v48 = vpop.f32.mrb[49].mxu0 }
 0x14e   : > { %v581_v49 = vadd.f32 %v580_v48, %v2098_v59  ;;  %v582_v50 = vpop.f32.mrb[50].mxu0  ;;  %1059 = vmatprep.mubr.bf16.mxu1 %v704_v45 }
 0x14f   : > { %v583_v51 = vadd.f32 %v582_v50, %v2094_v58  ;;  %v584_v52 = vpop.f32.mrb[51].mxu0  ;;  %1060 = vmatmul.mubr.bf16.gmra.mrb[32].mxu1 %v703_v44  ;;  %v665_v56 = vmax.f32 %v579_v47, 0.0  ;;  %v2169_v44 = vrot.slane %v745_v43, %v267_v55 }
 0x150   : > { %v585_v53 = vadd.f32 %v584_v52, %v2098_v59  ;;  %v666_v61 = vmax.f32 %v581_v49, 0.0 }
 0x151   : > { %v667_v60 = vmax.f32 %v583_v51, 0.0 }
 0x152   : > { %v668_v62 = vmax.f32 %v585_v53, 0.0 }
 0x153   : > { %v705_v63 = vpack.c.bf16 %v667_v60, %v665_v56 }
 0x154   : > { %v706_v0 = vpack.c.bf16 %v668_v62, %v666_v61  ;;  %v588_v1 = vpop.f32.mrb[52].mxu0 }
 0x155   : > { %v589_v2 = vadd.f32 %v588_v1, %v2094_v58  ;;  %v590_v3 = vpop.f32.mrb[53].mxu0 }
 0x156   : > { %v591_v4 = vadd.f32 %v590_v3, %v2098_v59  ;;  %v592_v5 = vpop.f32.mrb[54].mxu0  ;;  %1069 = vmatprep.mubr.bf16.mxu1 %v706_v0 }
 0x157   : > { %v593_v6 = vadd.f32 %v592_v5, %v2094_v58  ;;  %v594_v7 = vpop.f32.mrb[55].mxu0  ;;  %1070 = vmatmul.mubr.bf16.gmra.mrb[36].mxu1 %v705_v63  ;;  %v669_v9 = vmax.f32 %v589_v2, 0.0 }
 0x158   : > { %v595_v8 = vadd.f32 %v594_v7, %v2098_v59  ;;  %v670_v11 = vmax.f32 %v591_v4, 0.0 }
 0x159   : > { %v671_v10 = vmax.f32 %v593_v6, 0.0 }
 0x15a   : > { %v672_v12 = vmax.f32 %v595_v8, 0.0 }
 0x15b   : > { %v707_v13 = vpack.c.bf16 %v671_v10, %v669_v9 }
 0x15c   : > { %v708_v14 = vpack.c.bf16 %v672_v12, %v670_v11  ;;  %v598_v15 = vpop.f32.mrb[56].mxu0 }
 0x15d   : > { %v599_v16 = vadd.f32 %v598_v15, %v2094_v58  ;;  %v600_v17 = vpop.f32.mrb[57].mxu0 }
 0x15e   : > { %v601_v18 = vadd.f32 %v600_v17, %v2098_v59  ;;  %v602_v19 = vpop.f32.mrb[58].mxu0  ;;  %1079 = vmatprep.mubr.bf16.mxu1 %v708_v14 }
 0x15f   : > { %v603_v20 = vadd.f32 %v602_v19, %v2094_v58  ;;  %v604_v21 = vpop.f32.mrb[59].mxu0  ;;  %1080 = vmatmul.mubr.bf16.gmra.mrb[40].mxu1 %v707_v13  ;;  %v673_v23 = vmax.f32 %v599_v16, 0.0 }
 0x160   : > { %v605_v22 = vadd.f32 %v604_v21, %v2098_v59  ;;  %v674_v25 = vmax.f32 %v601_v18, 0.0 }
 0x161   : > { %v675_v24 = vmax.f32 %v603_v20, 0.0 }
 0x162   : > { %v676_v26 = vmax.f32 %v605_v22, 0.0 }
 0x163   : > { %v709_v27 = vpack.c.bf16 %v675_v24, %v673_v23 }
 0x164   : > { %v710_v28 = vpack.c.bf16 %v676_v26, %v674_v25  ;;  %v608_v29 = vpop.f32.mrb[60].mxu0 }
 0x165   : > { %v609_v30 = vadd.f32 %v608_v29, %v2094_v58  ;;  %v610_v31 = vpop.f32.mrb[61].mxu0 }
 0x166   : > { %v611_v32 = vadd.f32 %v610_v31, %v2098_v59  ;;  %v612_v33 = vpop.f32.mrb[62].mxu0  ;;  %1089 = vmatprep.mubr.bf16.mxu1 %v710_v28 }
 0x167   : > { %v613_v34 = vadd.f32 %v612_v33, %v2094_v58  ;;  %v614_v35 = vpop.f32.mrb[63].mxu0  ;;  %1090 = vmatmul.mubr.bf16.gmra.mrb[44].mxu1 %v709_v27  ;;  %v677_v37 = vmax.f32 %v609_v30, 0.0  ;;  %v2173_v58 = vrot.slane %v745_v43, %v271_v57 }
 0x168   : > { %v615_v36 = vadd.f32 %v614_v35, %v2098_v59  ;;  %v678_v39 = vmax.f32 %v611_v32, 0.0 }
 0x169   : > { %v679_v38 = vmax.f32 %v613_v34, 0.0 }
 0x16a   : > { %v680_v40 = vmax.f32 %v615_v36, 0.0 }
 0x16b   : > { %v711_v41 = vpack.c.bf16 %v679_v38, %v677_v37 }
 0x16c   : > { %v712_v42 = vpack.c.bf16 %v680_v40, %v678_v39 }
 0x16e   : > { %1099 = vmatprep.mubr.bf16.mxu1 %v712_v42 }
 0x16f   : > { %1100 = vmatmul.mubr.bf16.gmra.mrb[48].mxu1 %v711_v41 }
 0x1ca   : > { %v951_v59 = vpop.f32.mrb[64].mxu0 }
 0x1cb   : > { %v952_v45 = vadd.f32 %v951_v59, %v2169_v44  ;;  %v953_v46 = vpop.f32.mrb[65].mxu0 }
 0x1cc   : > { %v954_v47 = vadd.f32 %v953_v46, %v2173_v58  ;;  %v955_v48 = vpop.f32.mrb[66].mxu0 }
 0x1cd   : > { %v956_v49 = vadd.f32 %v955_v48, %v2169_v44  ;;  %v957_v50 = vpop.f32.mrb[67].mxu0  ;;  %v1110_v52 = vmax.f32 %v952_v45, 0.0 }
 0x1ce   : > { %v958_v51 = vadd.f32 %v957_v50, %v2173_v58  ;;  %v1111_v55 = vmax.f32 %v954_v47, 0.0 }
 0x1cf   : > { %v1112_v53 = vmax.f32 %v956_v49, 0.0 }
 0x1d0   : > { %v1113_v56 = vmax.f32 %v958_v51, 0.0 }
 0x1d1   : > { %v1174_v60 = vmax.f32 %v1110_v52, %v1112_v53 }
 0x1d2   : > { %v1181_v54 = vmax.f32 %v1111_v55, %v1113_v56  ;;  %v961_v57 = vpop.f32.mrb[68].mxu0 }
 0x1d3   : > { %v1175_v61 = vrot.slane %v1174_v60, 4  ;;  %v962_v62 = vadd.f32 %v961_v57, %v2169_v44  ;;  %v963_v63 = vpop.f32.mrb[69].mxu0 }
 0x1d4   : > { %v1182_v0 = vrot.slane %v1181_v54, 4  ;;  %v964_v1 = vadd.f32 %v963_v63, %v2173_v58  ;;  %v965_v2 = vpop.f32.mrb[70].mxu0 }
 0x1d5   : > { %v1176_v3 = vmax.f32 %v1174_v60, %v1175_v61  ;;  %v966_v4 = vadd.f32 %v965_v2, %v2169_v44  ;;  %v967_v5 = vpop.f32.mrb[71].mxu0  ;;  %v1114_v8 = vmax.f32 %v962_v62, 0.0 }
 0x1d6   : > { %v1183_v6 = vmax.f32 %v1181_v54, %v1182_v0  ;;  %v968_v7 = vadd.f32 %v967_v5, %v2173_v58  ;;  %v1115_v10 = vmax.f32 %v964_v1, 0.0 }
 0x1d7   : > { %v1116_v9 = vmax.f32 %v966_v4, 0.0  ;;  %v1177_v12 = vrot.slane %v1176_v3, 2 }
 0x1d8   : > { %v1117_v11 = vmax.f32 %v968_v7, 0.0  ;;  %v1184_v14 = vrot.slane %v1183_v6, 2 }
 0x1d9   : > { %v1188_v13 = vmax.f32 %v1114_v8, %v1116_v9  ;;  %v1178_v23 = vmax.f32 %v1176_v3, %v1177_v12 }
 0x1da   : > { %v1195_v15 = vmax.f32 %v1115_v10, %v1117_v11  ;;  %v971_v16 = vpop.f32.mrb[72].mxu0  ;;  %v1185_v27 = vmax.f32 %v1183_v6, %v1184_v14 }
 0x1db   : > { %v1189_v17 = vrot.slane %v1188_v13, 4  ;;  %v972_v18 = vadd.f32 %v971_v16, %v2169_v44  ;;  %v973_v19 = vpop.f32.mrb[73].mxu0  ;;  %v1179_v36 = vrot.slane %v1178_v23, 1 }
 0x1dc   : > { %v1196_v20 = vrot.slane %v1195_v15, 4  ;;  %v974_v21 = vadd.f32 %v973_v19, %v2173_v58  ;;  %v975_v22 = vpop.f32.mrb[74].mxu0  ;;  %v1186_v39 = vrot.slane %v1185_v27, 1 }
 0x1dd   : > { %v1190_v24 = vmax.f32 %v1188_v13, %v1189_v17  ;;  %v976_v25 = vadd.f32 %v975_v22, %v2169_v44  ;;  %v977_v26 = vpop.f32.mrb[75].mxu0  ;;  %v1118_v31 = vmax.f32 %v972_v18, 0.0  ;;  %v1180_v51 = vmax.f32 %v1178_v23, %v1179_v36 }
 0x1de   : > { %v1197_v28 = vmax.f32 %v1195_v15, %v1196_v20  ;;  %v978_v29 = vadd.f32 %v977_v26, %v2173_v58  ;;  %v1119_v34 = vmax.f32 %v974_v21, 0.0  ;;  %v1187_v60 = vmax.f32 %v1185_v27, %v1186_v39 }
 0x1df   : > { %v1191_v30 = vrot.slane %v1190_v24, 2  ;;  %v1120_v32 = vmax.f32 %v976_v25, 0.0 }
 0x1e0   : > { %v1198_v33 = vrot.slane %v1197_v28, 2  ;;  %v1121_v35 = vmax.f32 %v978_v29, 0.0 }
 0x1e1   : > { %v1192_v37 = vmax.f32 %v1190_v24, %v1191_v30  ;;  %v1202_v38 = vmax.f32 %v1118_v31, %v1120_v32 }
 0x1e2   : > { %v1199_v40 = vmax.f32 %v1197_v28, %v1198_v33  ;;  %v1209_v41 = vmax.f32 %v1119_v34, %v1121_v35  ;;  %v981_v42 = vpop.f32.mrb[0].mxu1 }
 0x1e3   : > { %v1193_v43 = vrot.slane %v1192_v37, 1  ;;  %v1203_v59 = vrot.slane %v1202_v38, 4  ;;  %v982_v45 = vadd.f32 %v981_v42, %v2169_v44  ;;  %v983_v46 = vpop.f32.mrb[1].mxu1 }
 0x1e4   : > { %v1200_v47 = vrot.slane %v1199_v40, 1  ;;  %v1210_v48 = vrot.slane %v1209_v41, 4  ;;  %v984_v49 = vadd.f32 %v983_v46, %v2173_v58  ;;  %v985_v50 = vpop.f32.mrb[2].mxu1 }
 0x1e5   : > { %v1194_v52 = vmax.f32 %v1192_v37, %v1193_v43  ;;  %v1204_v53 = vmax.f32 %v1202_v38, %v1203_v59  ;;  %v986_v55 = vadd.f32 %v985_v50, %v2169_v44  ;;  %v987_v56 = vpop.f32.mrb[3].mxu1  ;;  %v1122_v0 = vmax.f32 %v982_v45, 0.0 }
 0x1e6   : > { %v1201_v54 = vmax.f32 %v1199_v40, %v1200_v47  ;;  %v1211_v57 = vmax.f32 %v1209_v41, %v1210_v48  ;;  %v988_v61 = vadd.f32 %v987_v56, %v2173_v58  ;;  %v1123_v4 = vmax.f32 %v984_v49, 0.0 }
 0x1e7   : > { %v1431_v62 = vsel %vm1430_vm1, %v1194_v52, %v1180_v51  ;;  %v1205_v63 = vrot.slane %v1204_v53, 2  ;;  %v1124_v1 = vmax.f32 %v986_v55, 0.0 }
 0x1e8   : > { %v1444_v2 = vsel %vm1430_vm1, %v1201_v54, %v1187_v60  ;;  %v1212_v3 = vrot.slane %v1211_v57, 2  ;;  %v1125_v5 = vmax.f32 %v988_v61, 0.0 }
 0x1e9   : > { %v1206_v6 = vmax.f32 %v1204_v53, %v1205_v63  ;;  %v1216_v7 = vmax.f32 %v1122_v0, %v1124_v1 }
 0x1ea   : > { %v1213_v8 = vmax.f32 %v1211_v57, %v1212_v3  ;;  %v1223_v9 = vmax.f32 %v1123_v4, %v1125_v5  ;;  %v991_v10 = vpop.f32.mrb[4].mxu1 }
 0x1eb   : > { %v1207_v11 = vrot.slane %v1206_v6, 1  ;;  %v1217_v12 = vrot.slane %v1216_v7, 4  ;;  %v992_v13 = vadd.f32 %v991_v10, %v2169_v44  ;;  %v993_v14 = vpop.f32.mrb[5].mxu1 }
 0x1ec   : > { %v1214_v15 = vrot.slane %v1213_v8, 1  ;;  %v1224_v16 = vrot.slane %v1223_v9, 4  ;;  %v994_v17 = vadd.f32 %v993_v14, %v2173_v58  ;;  %v995_v18 = vpop.f32.mrb[6].mxu1 }
 0x1ed   : > { %v1208_v19 = vmax.f32 %v1206_v6, %v1207_v11  ;;  %v1218_v20 = vmax.f32 %v1216_v7, %v1217_v12  ;;  %v996_v21 = vadd.f32 %v995_v18, %v2169_v44  ;;  %v997_v22 = vpop.f32.mrb[7].mxu1  ;;  %v1126_v28 = vmax.f32 %v992_v13, 0.0 }
 0x1ee   : > { %v1215_v23 = vmax.f32 %v1213_v8, %v1214_v15  ;;  %v1225_v24 = vmax.f32 %v1223_v9, %v1224_v16  ;;  %v998_v25 = vadd.f32 %v997_v22, %v2173_v58  ;;  %v1127_v32 = vmax.f32 %v994_v17, 0.0 }
 0x1ef   : > { %v1433_v26 = vsel %vm1432_vm2, %v1208_v19, %v1431_v62  ;;  %v1219_v27 = vrot.slane %v1218_v20, 2  ;;  %v1128_v29 = vmax.f32 %v996_v21, 0.0 }
 0x1f0   : > { %v1445_v30 = vsel %vm1432_vm2, %v1215_v23, %v1444_v2  ;;  %v1226_v31 = vrot.slane %v1225_v24, 2  ;;  %v1129_v33 = vmax.f32 %v998_v25, 0.0 }
 0x1f1   : > { %v1220_v34 = vmax.f32 %v1218_v20, %v1219_v27  ;;  %v1230_v35 = vmax.f32 %v1126_v28, %v1128_v29 }
 0x1f2   : > { %v1227_v36 = vmax.f32 %v1225_v24, %v1226_v31  ;;  %v1237_v37 = vmax.f32 %v1127_v32, %v1129_v33  ;;  %v1001_v38 = vpop.f32.mrb[8].mxu1 }
 0x1f3   : > { %v1221_v39 = vrot.slane %v1220_v34, 1  ;;  %v1231_v40 = vrot.slane %v1230_v35, 4  ;;  %v1002_v41 = vadd.f32 %v1001_v38, %v2169_v44  ;;  %v1003_v42 = vpop.f32.mrb[9].mxu1 }
 0x1f4   : > { %v1228_v43 = vrot.slane %v1227_v36, 1  ;;  %v1238_v59 = vrot.slane %v1237_v37, 4  ;;  %v1004_v45 = vadd.f32 %v1003_v42, %v2173_v58  ;;  %v1005_v46 = vpop.f32.mrb[10].mxu1 }
 0x1f5   : > { %v1222_v47 = vmax.f32 %v1220_v34, %v1221_v39  ;;  %v1232_v48 = vmax.f32 %v1230_v35, %v1231_v40  ;;  %v1006_v49 = vadd.f32 %v1005_v46, %v2169_v44  ;;  %v1007_v50 = vpop.f32.mrb[11].mxu1  ;;  %v1130_v60 = vmax.f32 %v1002_v41, 0.0 }
 0x1f6   : > { %v1229_v51 = vmax.f32 %v1227_v36, %v1228_v43  ;;  %v1239_v52 = vmax.f32 %v1237_v37, %v1238_v59  ;;  %v1008_v53 = vadd.f32 %v1007_v50, %v2173_v58  ;;  %v1131_v62 = vmax.f32 %v1004_v45, 0.0 }
 0x1f7   : > { %v1435_v55 = vsel %vm1434_vm3, %v1222_v47, %v1433_v26  ;;  %v1233_v56 = vrot.slane %v1232_v48, 2  ;;  %v1132_v54 = vmax.f32 %v1006_v49, 0.0 }
 0x1f8   : > { %v1446_v57 = vsel %vm1434_vm3, %v1229_v51, %v1445_v30  ;;  %v1240_v61 = vrot.slane %v1239_v52, 2  ;;  %v1133_v63 = vmax.f32 %v1008_v53, 0.0 }
 0x1f9   : > { %v1234_v0 = vmax.f32 %v1232_v48, %v1233_v56  ;;  %v1244_v1 = vmax.f32 %v1130_v60, %v1132_v54 }
 0x1fa   : > { %v1241_v2 = vmax.f32 %v1239_v52, %v1240_v61  ;;  %v1251_v3 = vmax.f32 %v1131_v62, %v1133_v63  ;;  %v1011_v4 = vpop.f32.mrb[12].mxu1 }
 0x1fb   : > { %v1235_v5 = vrot.slane %v1234_v0, 1  ;;  %v1245_v6 = vrot.slane %v1244_v1, 4  ;;  %v1012_v7 = vadd.f32 %v1011_v4, %v2169_v44  ;;  %v1013_v8 = vpop.f32.mrb[13].mxu1 }
 0x1fc   : > { %v1242_v9 = vrot.slane %v1241_v2, 1  ;;  %v1252_v10 = vrot.slane %v1251_v3, 4  ;;  %v1014_v11 = vadd.f32 %v1013_v8, %v2173_v58  ;;  %v1015_v12 = vpop.f32.mrb[14].mxu1 }
 0x1fd   : > { %v1236_v13 = vmax.f32 %v1234_v0, %v1235_v5  ;;  %v1246_v14 = vmax.f32 %v1244_v1, %v1245_v6  ;;  %v1016_v15 = vadd.f32 %v1015_v12, %v2169_v44  ;;  %v1017_v16 = vpop.f32.mrb[15].mxu1  ;;  %v1134_v22 = vmax.f32 %v1012_v7, 0.0 }
 0x1fe   : > { %v1243_v17 = vmax.f32 %v1241_v2, %v1242_v9  ;;  %v1253_v18 = vmax.f32 %v1251_v3, %v1252_v10  ;;  %v1018_v19 = vadd.f32 %v1017_v16, %v2173_v58  ;;  %v1135_v26 = vmax.f32 %v1014_v11, 0.0 }
 0x1ff   : > { %v1437_v20 = vsel %vm1436_vm4, %v1236_v13, %v1435_v55  ;;  %v1247_v21 = vrot.slane %v1246_v14, 2  ;;  %v1136_v23 = vmax.f32 %v1016_v15, 0.0 }
 0x200   : > { %v1447_v24 = vsel %vm1436_vm4, %v1243_v17, %v1446_v57  ;;  %v1254_v25 = vrot.slane %v1253_v18, 2  ;;  %v1137_v27 = vmax.f32 %v1018_v19, 0.0 }
 0x201   : > { %v1248_v28 = vmax.f32 %v1246_v14, %v1247_v21  ;;  %v1258_v29 = vmax.f32 %v1134_v22, %v1136_v23 }
 0x202   : > { %v1255_v30 = vmax.f32 %v1253_v18, %v1254_v25  ;;  %v1265_v31 = vmax.f32 %v1135_v26, %v1137_v27  ;;  %v1021_v32 = vpop.f32.mrb[16].mxu1 }
 0x203   : > { %v1249_v33 = vrot.slane %v1248_v28, 1  ;;  %v1259_v34 = vrot.slane %v1258_v29, 4  ;;  %v1022_v35 = vadd.f32 %v1021_v32, %v2169_v44  ;;  %v1023_v36 = vpop.f32.mrb[17].mxu1 }
 0x204   : > { %v1256_v37 = vrot.slane %v1255_v30, 1  ;;  %v1266_v38 = vrot.slane %v1265_v31, 4  ;;  %v1024_v39 = vadd.f32 %v1023_v36, %v2173_v58  ;;  %v1025_v40 = vpop.f32.mrb[18].mxu1 }
 0x205   : > { %v1250_v41 = vmax.f32 %v1248_v28, %v1249_v33  ;;  %v1260_v42 = vmax.f32 %v1258_v29, %v1259_v34  ;;  %v1026_v43 = vadd.f32 %v1025_v40, %v2169_v44  ;;  %v1027_v59 = vpop.f32.mrb[19].mxu1  ;;  %v1138_v50 = vmax.f32 %v1022_v35, 0.0 }
 0x206   : > { %v1257_v45 = vmax.f32 %v1255_v30, %v1256_v37  ;;  %v1267_v46 = vmax.f32 %v1265_v31, %v1266_v38  ;;  %v1028_v47 = vadd.f32 %v1027_v59, %v2173_v58  ;;  %v1139_v55 = vmax.f32 %v1024_v39, 0.0 }
 0x207   : > { %v1439_v48 = vsel %vm1438_vm5, %v1250_v41, %v1437_v20  ;;  %v1261_v49 = vrot.slane %v1260_v42, 2  ;;  %v1140_v51 = vmax.f32 %v1026_v43, 0.0 }
 0x208   : > { %v1448_v52 = vsel %vm1438_vm5, %v1257_v45, %v1447_v24  ;;  %v1268_v53 = vrot.slane %v1267_v46, 2  ;;  %v1141_v56 = vmax.f32 %v1028_v47, 0.0 }
 0x209   : > { %v1262_v60 = vmax.f32 %v1260_v42, %v1261_v49  ;;  %v1272_v54 = vmax.f32 %v1138_v50, %v1140_v51 }
 0x20a   : > { %v1269_v57 = vmax.f32 %v1267_v46, %v1268_v53  ;;  %v1279_v61 = vmax.f32 %v1139_v55, %v1141_v56  ;;  %v1031_v62 = vpop.f32.mrb[20].mxu1 }
 0x20b   : > { %v1263_v63 = vrot.slane %v1262_v60, 1  ;;  %v1273_v0 = vrot.slane %v1272_v54, 4  ;;  %v1032_v1 = vadd.f32 %v1031_v62, %v2169_v44  ;;  %v1033_v2 = vpop.f32.mrb[21].mxu1 }
 0x20c   : > { %v1270_v3 = vrot.slane %v1269_v57, 1  ;;  %v1280_v4 = vrot.slane %v1279_v61, 4  ;;  %v1034_v5 = vadd.f32 %v1033_v2, %v2173_v58  ;;  %v1035_v6 = vpop.f32.mrb[22].mxu1 }
 0x20d   : > { %v1264_v7 = vmax.f32 %v1262_v60, %v1263_v63  ;;  %v1274_v8 = vmax.f32 %v1272_v54, %v1273_v0  ;;  %v1036_v9 = vadd.f32 %v1035_v6, %v2169_v44  ;;  %v1037_v10 = vpop.f32.mrb[23].mxu1  ;;  %v1142_v16 = vmax.f32 %v1032_v1, 0.0 }
 0x20e   : > { %v1271_v11 = vmax.f32 %v1269_v57, %v1270_v3  ;;  %v1281_v12 = vmax.f32 %v1279_v61, %v1280_v4  ;;  %v1038_v13 = vadd.f32 %v1037_v10, %v2173_v58  ;;  %v1143_v20 = vmax.f32 %v1034_v5, 0.0 }
 0x20f   : > { %v1441_v14 = vsel %vm1440_vm6, %v1264_v7, %v1439_v48  ;;  %v1275_v15 = vrot.slane %v1274_v8, 2  ;;  %v1144_v17 = vmax.f32 %v1036_v9, 0.0 }
 0x210   : > { %v1449_v18 = vsel %vm1440_vm6, %v1271_v11, %v1448_v52  ;;  %v1282_v19 = vrot.slane %v1281_v12, 2  ;;  %v1145_v21 = vmax.f32 %v1038_v13, 0.0 }
 0x211   : > { %v1276_v22 = vmax.f32 %v1274_v8, %v1275_v15  ;;  %v1286_v23 = vmax.f32 %v1142_v16, %v1144_v17 }
 0x212   : > { %v1283_v24 = vmax.f32 %v1281_v12, %v1282_v19  ;;  %v1293_v25 = vmax.f32 %v1143_v20, %v1145_v21  ;;  %v1041_v26 = vpop.f32.mrb[24].mxu1 }
 0x213   : > { %v1277_v27 = vrot.slane %v1276_v22, 1  ;;  %v1287_v28 = vrot.slane %v1286_v23, 4  ;;  %v1042_v29 = vadd.f32 %v1041_v26, %v2169_v44  ;;  %v1043_v30 = vpop.f32.mrb[25].mxu1 }
 0x214   : > { %v1284_v31 = vrot.slane %v1283_v24, 1  ;;  %v1294_v32 = vrot.slane %v1293_v25, 4  ;;  %v1044_v33 = vadd.f32 %v1043_v30, %v2173_v58  ;;  %v1045_v34 = vpop.f32.mrb[26].mxu1 }
 0x215   : > { %v1278_v35 = vmax.f32 %v1276_v22, %v1277_v27  ;;  %v1288_v36 = vmax.f32 %v1286_v23, %v1287_v28  ;;  %v1046_v37 = vadd.f32 %v1045_v34, %v2169_v44  ;;  %v1047_v38 = vpop.f32.mrb[27].mxu1  ;;  %v1146_v43 = vmax.f32 %v1042_v29, 0.0 }
 0x216   : > { %v1285_v39 = vmax.f32 %v1283_v24, %v1284_v31  ;;  %v1295_v40 = vmax.f32 %v1293_v25, %v1294_v32  ;;  %v1048_v41 = vadd.f32 %v1047_v38, %v2173_v58  ;;  %v1147_v46 = vmax.f32 %v1044_v33, 0.0 }
 0x217   : > { %v1443_v42 = vsel %vm1442_vm7, %v1278_v35, %v1441_v14  ;;  %v1148_v59 = vmax.f32 %v1046_v37, 0.0  ;;  %v1289_v48 = vrot.slane %v1288_v36, 2 }
 0x218   : > { %1469 = vst [vmem:[%s2231_s11] sm:$0xff] %v1443_v42  ;;  %v1450_v45 = vsel %vm1442_vm7, %v1285_v39, %v1449_v18  ;;  %v1149_v47 = vmax.f32 %v1048_v41, 0.0  ;;  %v1296_v50 = vrot.slane %v1295_v40, 2 }
 0x219   : > { %1470 = vst [vmem:[%s2231_s11 + $0x8] sm:$0xff] %v1450_v45  ;;  %v1300_v49 = vmax.f32 %v1146_v43, %v1148_v59  ;;  %v1290_v61 = vmax.f32 %v1288_v36, %v1289_v48 }
 0x21a   : > { %v1307_v51 = vmax.f32 %v1147_v46, %v1149_v47  ;;  %v1051_v52 = vpop.f32.mrb[28].mxu1  ;;  %v1297_v1 = vmax.f32 %v1295_v40, %v1296_v50 }
 0x21b   : > { %v1301_v53 = vrot.slane %v1300_v49, 4  ;;  %v1052_v55 = vadd.f32 %v1051_v52, %v2169_v44  ;;  %v1053_v56 = vpop.f32.mrb[29].mxu1  ;;  %v1291_v10 = vrot.slane %v1290_v61, 1 }
 0x21c   : > { %v1308_v60 = vrot.slane %v1307_v51, 4  ;;  %v1054_v54 = vadd.f32 %v1053_v56, %v2173_v58  ;;  %v1055_v57 = vpop.f32.mrb[30].mxu1  ;;  %v1298_v13 = vrot.slane %v1297_v1, 1 }
 0x21d   : > { %v1302_v62 = vmax.f32 %v1300_v49, %v1301_v53  ;;  %v1056_v63 = vadd.f32 %v1055_v57, %v2169_v44  ;;  %v1057_v0 = vpop.f32.mrb[31].mxu1  ;;  %v1150_v5 = vmax.f32 %v1052_v55, 0.0  ;;  %v1292_v25 = vmax.f32 %v1290_v61, %v1291_v10 }
 0x21e   : > { %v1309_v2 = vmax.f32 %v1307_v51, %v1308_v60  ;;  %v1058_v3 = vadd.f32 %v1057_v0, %v2173_v58  ;;  %v1151_v8 = vmax.f32 %v1054_v54, 0.0  ;;  %v1299_v30 = vmax.f32 %v1297_v1, %v1298_v13 }
 0x21f   : > { %v1303_v4 = vrot.slane %v1302_v62, 2  ;;  %v1152_v6 = vmax.f32 %v1056_v63, 0.0 }
 0x220   : > { %v1310_v7 = vrot.slane %v1309_v2, 2  ;;  %v1153_v9 = vmax.f32 %v1058_v3, 0.0 }
 0x221   : > { %v1304_v11 = vmax.f32 %v1302_v62, %v1303_v4  ;;  %v1314_v12 = vmax.f32 %v1150_v5, %v1152_v6 }
 0x222   : > { %v1311_v14 = vmax.f32 %v1309_v2, %v1310_v7  ;;  %v1321_v15 = vmax.f32 %v1151_v8, %v1153_v9  ;;  %v1061_v16 = vpop.f32.mrb[32].mxu1 }
 0x223   : > { %v1305_v17 = vrot.slane %v1304_v11, 1  ;;  %v1315_v18 = vrot.slane %v1314_v12, 4  ;;  %v1062_v19 = vadd.f32 %v1061_v16, %v2169_v44  ;;  %v1063_v20 = vpop.f32.mrb[33].mxu1 }
 0x224   : > { %v1312_v21 = vrot.slane %v1311_v14, 1  ;;  %v1322_v22 = vrot.slane %v1321_v15, 4  ;;  %v1064_v23 = vadd.f32 %v1063_v20, %v2173_v58  ;;  %v1065_v24 = vpop.f32.mrb[34].mxu1 }
 0x225   : > { %v1306_v26 = vmax.f32 %v1304_v11, %v1305_v17  ;;  %v1316_v27 = vmax.f32 %v1314_v12, %v1315_v18  ;;  %v1066_v28 = vadd.f32 %v1065_v24, %v2169_v44  ;;  %v1067_v29 = vpop.f32.mrb[35].mxu1  ;;  %v1154_v36 = vmax.f32 %v1062_v19, 0.0 }
 0x226   : > { %v1313_v31 = vmax.f32 %v1311_v14, %v1312_v21  ;;  %v1323_v32 = vmax.f32 %v1321_v15, %v1322_v22  ;;  %v1068_v33 = vadd.f32 %v1067_v29, %v2173_v58  ;;  %v1155_v40 = vmax.f32 %v1064_v23, 0.0 }
 0x227   : > { %v1451_v34 = vsel %vm1430_vm1, %v1306_v26, %v1292_v25  ;;  %v1317_v35 = vrot.slane %v1316_v27, 2  ;;  %v1156_v37 = vmax.f32 %v1066_v28, 0.0 }
 0x228   : > { %v1458_v38 = vsel %vm1430_vm1, %v1313_v31, %v1299_v30  ;;  %v1324_v39 = vrot.slane %v1323_v32, 2  ;;  %v1157_v41 = vmax.f32 %v1068_v33, 0.0 }
 0x229   : > { %v1318_v42 = vmax.f32 %v1316_v27, %v1317_v35  ;;  %v1328_v43 = vmax.f32 %v1154_v36, %v1156_v37 }
 0x22a   : > { %v1325_v59 = vmax.f32 %v1323_v32, %v1324_v39  ;;  %v1335_v45 = vmax.f32 %v1155_v40, %v1157_v41  ;;  %v1071_v46 = vpop.f32.mrb[36].mxu1 }
 0x22b   : > { %v1319_v47 = vrot.slane %v1318_v42, 1  ;;  %v1329_v48 = vrot.slane %v1328_v43, 4  ;;  %v1072_v49 = vadd.f32 %v1071_v46, %v2169_v44  ;;  %v1073_v50 = vpop.f32.mrb[37].mxu1 }
 0x22c   : > { %v1326_v51 = vrot.slane %v1325_v59, 1  ;;  %v1336_v52 = vrot.slane %v1335_v45, 4  ;;  %v1074_v53 = vadd.f32 %v1073_v50, %v2173_v58  ;;  %v1075_v55 = vpop.f32.mrb[38].mxu1 }
 0x22d   : > { %v1320_v56 = vmax.f32 %v1318_v42, %v1319_v47  ;;  %v1330_v60 = vmax.f32 %v1328_v43, %v1329_v48  ;;  %v1076_v54 = vadd.f32 %v1075_v55, %v2169_v44  ;;  %v1077_v57 = vpop.f32.mrb[39].mxu1  ;;  %v1158_v2 = vmax.f32 %v1072_v49, 0.0 }
 0x22e   : > { %v1327_v61 = vmax.f32 %v1325_v59, %v1326_v51  ;;  %v1337_v62 = vmax.f32 %v1335_v45, %v1336_v52  ;;  %v1078_v63 = vadd.f32 %v1077_v57, %v2173_v58  ;;  %v1159_v6 = vmax.f32 %v1074_v53, 0.0 }
 0x22f   : > { %v1452_v0 = vsel %vm1432_vm2, %v1320_v56, %v1451_v34  ;;  %v1331_v1 = vrot.slane %v1330_v60, 2  ;;  %v1160_v3 = vmax.f32 %v1076_v54, 0.0 }
 0x230   : > { %v1459_v4 = vsel %vm1432_vm2, %v1327_v61, %v1458_v38  ;;  %v1338_v5 = vrot.slane %v1337_v62, 2  ;;  %v1161_v7 = vmax.f32 %v1078_v63, 0.0 }
 0x231   : > { %v1332_v8 = vmax.f32 %v1330_v60, %v1331_v1  ;;  %v1342_v9 = vmax.f32 %v1158_v2, %v1160_v3 }
 0x232   : > { %v1339_v10 = vmax.f32 %v1337_v62, %v1338_v5  ;;  %v1349_v11 = vmax.f32 %v1159_v6, %v1161_v7  ;;  %v1081_v12 = vpop.f32.mrb[40].mxu1 }
 0x233   : > { %v1333_v13 = vrot.slane %v1332_v8, 1  ;;  %v1343_v14 = vrot.slane %v1342_v9, 4  ;;  %v1082_v15 = vadd.f32 %v1081_v12, %v2169_v44  ;;  %v1083_v16 = vpop.f32.mrb[41].mxu1 }
 0x234   : > { %v1340_v17 = vrot.slane %v1339_v10, 1  ;;  %v1350_v18 = vrot.slane %v1349_v11, 4  ;;  %v1084_v19 = vadd.f32 %v1083_v16, %v2173_v58  ;;  %v1085_v20 = vpop.f32.mrb[42].mxu1 }
 0x235   : > { %v1334_v21 = vmax.f32 %v1332_v8, %v1333_v13  ;;  %v1344_v22 = vmax.f32 %v1342_v9, %v1343_v14  ;;  %v1086_v23 = vadd.f32 %v1085_v20, %v2169_v44  ;;  %v1087_v24 = vpop.f32.mrb[43].mxu1  ;;  %v1162_v30 = vmax.f32 %v1082_v15, 0.0 }
 0x236   : > { %v1341_v25 = vmax.f32 %v1339_v10, %v1340_v17  ;;  %v1351_v26 = vmax.f32 %v1349_v11, %v1350_v18  ;;  %v1088_v27 = vadd.f32 %v1087_v24, %v2173_v58  ;;  %v1163_v34 = vmax.f32 %v1084_v19, 0.0 }
 0x237   : > { %v1453_v28 = vsel %vm1434_vm3, %v1334_v21, %v1452_v0  ;;  %v1345_v29 = vrot.slane %v1344_v22, 2  ;;  %v1164_v31 = vmax.f32 %v1086_v23, 0.0 }
 0x238   : > { %v1460_v32 = vsel %vm1434_vm3, %v1341_v25, %v1459_v4  ;;  %v1352_v33 = vrot.slane %v1351_v26, 2  ;;  %v1165_v35 = vmax.f32 %v1088_v27, 0.0 }
 0x239   : > { %v1346_v36 = vmax.f32 %v1344_v22, %v1345_v29  ;;  %v1356_v37 = vmax.f32 %v1162_v30, %v1164_v31 }
 0x23a   : > { %v1353_v38 = vmax.f32 %v1351_v26, %v1352_v33  ;;  %v1363_v39 = vmax.f32 %v1163_v34, %v1165_v35  ;;  %v1091_v40 = vpop.f32.mrb[44].mxu1 }
 0x23b   : > { %v1347_v41 = vrot.slane %v1346_v36, 1  ;;  %v1357_v42 = vrot.slane %v1356_v37, 4  ;;  %v1092_v43 = vadd.f32 %v1091_v40, %v2169_v44  ;;  %v1093_v59 = vpop.f32.mrb[45].mxu1 }
 0x23c   : > { %v1354_v45 = vrot.slane %v1353_v38, 1  ;;  %v1364_v46 = vrot.slane %v1363_v39, 4  ;;  %v1094_v47 = vadd.f32 %v1093_v59, %v2173_v58  ;;  %v1095_v48 = vpop.f32.mrb[46].mxu1 }
 0x23d   : > { %v1348_v49 = vmax.f32 %v1346_v36, %v1347_v41  ;;  %v1358_v50 = vmax.f32 %v1356_v37, %v1357_v42  ;;  %v1096_v51 = vadd.f32 %v1095_v48, %v2169_v44  ;;  %v1097_v52 = vpop.f32.mrb[47].mxu1  ;;  %v1166_v57 = vmax.f32 %v1092_v43, 0.0 }
 0x23e   : > { %v1355_v53 = vmax.f32 %v1353_v38, %v1354_v45  ;;  %v1365_v55 = vmax.f32 %v1363_v39, %v1364_v46  ;;  %v1098_v56 = vadd.f32 %v1097_v52, %v2173_v58  ;;  %v1167_v0 = vmax.f32 %v1094_v47, 0.0 }
 0x23f   : > { %v1454_v60 = vsel %vm1436_vm4, %v1348_v49, %v1453_v28  ;;  %v1359_v54 = vrot.slane %v1358_v50, 2  ;;  %v1168_v61 = vmax.f32 %v1096_v51, 0.0 }
 0x240   : > { %v1461_v62 = vsel %vm1436_vm4, %v1355_v53, %v1460_v32  ;;  %v1366_v63 = vrot.slane %v1365_v55, 2  ;;  %v1169_v1 = vmax.f32 %v1098_v56, 0.0 }
 0x241   : > { %v1360_v2 = vmax.f32 %v1358_v50, %v1359_v54  ;;  %v1370_v3 = vmax.f32 %v1166_v57, %v1168_v61 }
 0x242   : > { %v1367_v4 = vmax.f32 %v1365_v55, %v1366_v63  ;;  %v1377_v5 = vmax.f32 %v1167_v0, %v1169_v1  ;;  %v1101_v6 = vpop.f32.mrb[48].mxu1 }
 0x243   : > { %v1361_v7 = vrot.slane %v1360_v2, 1  ;;  %v1371_v8 = vrot.slane %v1370_v3, 4  ;;  %v1102_v9 = vadd.f32 %v1101_v6, %v2169_v44  ;;  %v1103_v10 = vpop.f32.mrb[49].mxu1 }
 0x244   : > { %v1368_v11 = vrot.slane %v1367_v4, 1  ;;  %v1378_v12 = vrot.slane %v1377_v5, 4  ;;  %v1104_v13 = vadd.f32 %v1103_v10, %v2173_v58  ;;  %v1105_v14 = vpop.f32.mrb[50].mxu1 }
 0x245   : > { %v1362_v15 = vmax.f32 %v1360_v2, %v1361_v7  ;;  %v1372_v16 = vmax.f32 %v1370_v3, %v1371_v8  ;;  %v1106_v17 = vadd.f32 %v1105_v14, %v2169_v44  ;;  %v1107_v18 = vpop.f32.mrb[51].mxu1  ;;  %v1170_v24 = vmax.f32 %v1102_v9, 0.0 }
 0x246   : > { %v1369_v19 = vmax.f32 %v1367_v4, %v1368_v11  ;;  %v1379_v20 = vmax.f32 %v1377_v5, %v1378_v12  ;;  %v1108_v21 = vadd.f32 %v1107_v18, %v2173_v58  ;;  %v1171_v28 = vmax.f32 %v1104_v13, 0.0 }
 0x247   : > { %v1455_v22 = vsel %vm1438_vm5, %v1362_v15, %v1454_v60  ;;  %v1373_v23 = vrot.slane %v1372_v16, 2  ;;  %v1172_v25 = vmax.f32 %v1106_v17, 0.0 }
 0x248   : > { %v1462_v26 = vsel %vm1438_vm5, %v1369_v19, %v1461_v62  ;;  %v1380_v27 = vrot.slane %v1379_v20, 2  ;;  %v1173_v29 = vmax.f32 %v1108_v21, 0.0 }
 0x249   : > { %v1374_v30 = vmax.f32 %v1372_v16, %v1373_v23  ;;  %v1384_v31 = vmax.f32 %v1170_v24, %v1172_v25 }
 0x24a   : > { %v1381_v32 = vmax.f32 %v1379_v20, %v1380_v27  ;;  %v1391_v33 = vmax.f32 %v1171_v28, %v1173_v29 }
 0x24b   : > { %v1375_v44 = vrot.slane %v1374_v30, 1  ;;  %v1385_v34 = vrot.slane %v1384_v31, 4 }
 0x24c   : > { %v1382_v35 = vrot.slane %v1381_v32, 1  ;;  %v1392_v58 = vrot.slane %v1391_v33, 4 }
 0x24d   : > { %v1376_v36 = vmax.f32 %v1374_v30, %v1375_v44  ;;  %v1386_v37 = vmax.f32 %v1384_v31, %v1385_v34 }
 0x24e   : > { %v1383_v38 = vmax.f32 %v1381_v32, %v1382_v35  ;;  %v1393_v39 = vmax.f32 %v1391_v33, %v1392_v58 }
 0x24f   : > { %v1456_v40 = vsel %vm1440_vm6, %v1376_v36, %v1455_v22  ;;  %v1387_v41 = vrot.slane %v1386_v37, 2 }
 0x250   : > { %v1463_v42 = vsel %vm1440_vm6, %v1383_v38, %v1462_v26  ;;  %v1394_v43 = vrot.slane %v1393_v39, 2 }
 0x251   : > { %v1388_v59 = vmax.f32 %v1386_v37, %v1387_v41 }
 0x252   : > { %v1395_v45 = vmax.f32 %v1393_v39, %v1394_v43 }
 0x253   : > { %v1389_v46 = vrot.slane %v1388_v59, 1 }
 0x254   : > { %v1396_v47 = vrot.slane %v1395_v45, 1 }
 0x255   : > { %v1390_v48 = vmax.f32 %v1388_v59, %v1389_v46 }
 0x256   : > { %v1397_v49 = vmax.f32 %v1395_v45, %v1396_v47 }
 0x257   : > { %v1457_v50 = vsel %vm1442_vm7, %v1390_v48, %v1456_v40 }
 0x258   : > { %1471 = vst [vmem:[%s2231_s11 + $0x10] sm:$0xff] %v1457_v50  ;;  %v1464_v51 = vsel %vm1442_vm7, %v1397_v49, %v1463_v42 }
 0x259   : > { %1472 = vst [vmem:[%s2231_s11 + $0x18] sm:$0xff] %v1464_v51 }
 0x25a   : > { %1790 = shalt.err (!%p1787_p3)
}
 0x25b   : > { %s1791_s30 = scalar_lea.hbm %s2277_s16, 512  ;;  %s1795_s9 = scalar_lea.hbm %s2333_s5, 1024 }
 0x25c   : > { %p1792_p4 = scmp.ne.s32.totalorder %s2277_s16, %s1791_s30  ;;  %p1796_p9 = scmp.lt.u32.totalorder %s2277_s16, %s2333_s5 }
 0x25d   : > { %p1797_p10 = scmp.lt.u32.totalorder %s1795_s9, %s1791_s30  ;;  %p1799_p12 = scmp.lt.u32.totalorder %s1791_s30, %s2277_s16 }
 0x25e   : > { %p1793_p7 = pnand %p1792_p4, %p1913_p5 }
 0x25f   : > { %p1798_p11 = por %p1797_p10, %p1796_p9 }
 0x260   : > { %p1794_p8 = pneg %p1793_p7 }
 0x261   : > { %p1800_p13 = por %p1799_p12, %p1798_p11 }
 0x263   : > { %p1801_p0 = pnand %p1800_p13, %p1794_p8 }
 0x265   : > { %1804 = shalt.err (!%p1801_p0)
}
 0x266   : > { %s1843_s11 = smov 256   ;;  %s1844_s12 = smov 16  }
 0x267   : > { %1665 = dma.vmem_to_hbm [thread:$0]  (%p1913_p5), %s2279_s13, 512, %s2277_s16, %s2287_s22, %s1843_s11, %s1843_s11, %s1844_s12  }
 0x268 PF: > { %p1671_p1 = scmp.ge.s32.totalorder %s1839_s21, 2  ;;  %s1503_s14 = sand.u32 1, %s1827_s18  }
 0x269   : > { %s1504_s15 = scalar_lea.sflag [#allocation3], %s1503_s14 }
 0x26a   : > { %p1668_p2 = pnand %p1671_p1, %p1917_p6 }
 0x26c   : > { %1822 = dma.done.wait (!%p1668_p2), %s1504_s15, 512  }
 0x26d   : > { %1824 = vsyncadd (!%p1668_p2), %s1504_s15, 4294966784  ;;  %p15_p3 = scmp.ge.s32.totalorder %s1900_s24, 4   ;;  %s2336_s18 = smov %s1831_s19 }
 0x26e   : > { %s2337_s19 = smov %s1835_s20  ;;  %s2338_s20 = smov %s1911_s27 }
 0x26f   : > { %s2339_s21 = smov %s1900_s24  ;;  %17 = sbr.rel (!%p15_p3) target bundleno = 3 (0x3), region = 75 }
 0x276   :  { %1509 = vsyncpa [#allocation3], 1 }
 0x277   :  { %1511 = vsyncpa [#allocation3 + $0x1], 1 }

</bundles_post_ra>
